<compile_context>
chip_gen: v7x
topology: tpu7x:2x2x1
jax: 0.10.0
libtpu: 0.0.40
codegen_flags: <defaults>
</compile_context>

<pallas_src>
import functools

import jax
import jax.numpy as jnp
from jax.experimental import pallas as pl
from jax.experimental.pallas import tpu as pltpu

ACT = "ReLU"  # getattr(nn, act)() in the reference module.
_VMEM_LIMIT = 40 * 1024 * 1024  # comfortable on v5e/v6e (128 MiB) and v7x (64 MiB)


def _round_up(x, m):
    return (x + m - 1) // m * m


# ---------------------------------------------------------------------------
# Kernel 1: fused im2col + GEMM for a 3x3 / stride-1 / VALID convolution.
#
# The input image is flattened to (P, Cin) with row pitch = image width W.
# Output "wide" row m = i*W + j; tap (ki, kj) contributes
#   x_flat[m + ki*W + kj] @ w[ki, kj]     (a contiguous row-offset slice).
# Columns j >= W-2 of each output row are garbage (wrap-around) and are sliced
# away in the wrapper; padded rows at the bottom keep every slice in bounds.
# ---------------------------------------------------------------------------
def _fused_conv_kernel(x_ref, w_ref, b_ref, o_ref, *, offs, tm, win, apply_act):
    # x_ref: (1, P, Cin) whole flat image (resident across the m axis)
    # w_ref: (9, Cin, Cout) resident;  b_ref: (1, Cout);  o_ref: (1, tm, Cout)
    base = pl.multiple_of(pl.program_id(1) * tm, 16)      # tile-aligned dynamic start
    xwin = x_ref[0, pl.ds(base, win), :]                   # (tm + halo, Cin)
    acc = None
    for t, off in enumerate(offs):                         # 9 static tap offsets
        lhs = xwin[off:off + tm, :]                        # static (unaligned) slice
        part = jnp.dot(lhs, w_ref[t], preferred_element_type=jnp.float32)
        acc = part if acc is None else acc + part
    acc = acc + b_ref[...].astype(jnp.float32)
    if apply_act:
        acc = jnp.maximum(acc, 0.0)                        # ReLU
    o_ref[0] = acc.astype(o_ref.dtype)


def _pick_conv_tm(M, target_steps=4, cap=4608):
    """~4 grid steps per image for large layers (>= 8 total at batch 2, so both
    v7x TensorCores stay busy and the LHS DMA pipelines); 1 step for tiny M."""
    if M <= 1024:
        return _round_up(M, 16)
    return _round_up(min(cap, pl.cdiv(M, target_steps)), 16)


def conv3x3_s1(x, w9, b, apply_act, out_dtype=jnp.bfloat16):
    """Fused VALID 3x3 stride-1 conv.  x: (B,H,W,Cin) NHWC bf16;
    w9: (9, Cin_k, Cout) packed bf16 (Cin_k >= Cin);  b: (1, Cout) f32."""
    B, H, W, Cin = x.shape
    Cin_k, Cout = w9.shape[1], w9.shape[2]
    Ho, Wo = H - 2, W - 2
    M = Ho * W                                    # wide output rows (pitch W)
    tm = _pick_conv_tm(M)
    n_m = pl.cdiv(M, tm)
    Mp = n_m * tm
    halo = _round_up(2 * W + 2, 16)               # max tap offset, tile-rounded
    win = tm + halo
    Pp = Mp + halo                                # padded flat length

    xf = x.reshape(B, H * W, Cin)
    xf = jnp.pad(xf, ((0, 0), (0, Pp - H * W), (0, Cin_k - Cin)))
    offs = tuple(ki * W + kj for ki in range(3) for kj in range(3))

    y = pl.pallas_call(
        functools.partial(_fused_conv_kernel, offs=offs, tm=tm, win=win,
                          apply_act=apply_act),
        out_shape=jax.ShapeDtypeStruct((B, Mp, Cout), out_dtype),
        grid_spec=pltpu.PrefetchScalarGridSpec(
            num_scalar_prefetch=0,
            grid=(B, n_m),
            in_specs=[
                pl.BlockSpec((1, Pp, Cin_k), lambda bi, mi: (bi, 0, 0)),   # resident image
                pl.BlockSpec((9, Cin_k, Cout), lambda bi, mi: (0, 0, 0)),  # resident weights
                pl.BlockSpec((1, Cout), lambda bi, mi: (0, 0)),
            ],
            out_specs=pl.BlockSpec((1, tm, Cout), lambda bi, mi: (bi, mi, 0)),
        ),
        compiler_params=pltpu.CompilerParams(
            dimension_semantics=("parallel", "parallel"),
            vmem_limit_bytes=_VMEM_LIMIT),
    )(xf, w9, b)

    # wide (B, Mp, Cout) -> compact NHWC (B, Ho, Wo, Cout); the column slice is
    # lazy and fuses into the consuming XLA glue (pool/pad/dilate/upsample).
    y = y[:, :Ho * W, :].reshape(B, Ho, W, Cout)[:, :, :Wo, :]
    return y


# ---------------------------------------------------------------------------
# Kernel 2: plain GEMM (+bias, +ReLU) — used only for the two stride-2 encoder
# convs (small im2col) .
# ---------------------------------------------------------------------------
def _matmul_bias_act_kernel(x_ref, w_ref, b_ref, o_ref, *, apply_act):
    acc = jnp.dot(x_ref[...], w_ref[...], preferred_element_type=jnp.float32)
    acc = acc + b_ref[...].astype(jnp.float32)
    if apply_act:
        acc = jnp.maximum(acc, 0.0)
    o_ref[...] = acc.astype(o_ref.dtype)


def _pick_tm(M, min_steps=8):
    if M <= 1024:
        return _round_up(M, 8)
    return max(256, min(2048, _round_up(pl.cdiv(M, min_steps), 128)))


def matmul_bias_act(x, w, b, apply_act, out_dtype=jnp.bfloat16):
    """y = act(x @ w + b);  x:(M,K) bf16  w:(K,N) bf16  b:(1,N) f32."""
    M, K = x.shape
    _, N = w.shape
    x = x.astype(jnp.bfloat16)
    tm = _pick_tm(M)
    Mp = _round_up(M, tm)
    if N < 128:
        tn = N
    elif Mp == tm and N >= 256:
        tn = 128                     # >= 2 (i, j) tiles for v7x's two TensorCores
    else:
        tn = min(512, _round_up(N, 128))
    Np = _round_up(N, tn)

    xp = jnp.pad(x, ((0, Mp - M), (0, 0))) if Mp != M else x
    wp = jnp.pad(w, ((0, 0), (0, Np - N))) if Np != N else w
    bp = jnp.pad(b, ((0, 0), (0, Np - N))) if Np != N else b

    out = pl.pallas_call(
        functools.partial(_matmul_bias_act_kernel, apply_act=apply_act),
        out_shape=jax.ShapeDtypeStruct((Mp, Np), out_dtype),
        grid_spec=pltpu.PrefetchScalarGridSpec(
            num_scalar_prefetch=0,
            grid=(Mp // tm, Np // tn),
            in_specs=[
                pl.BlockSpec((tm, K), lambda i, j: (i, 0)),
                pl.BlockSpec((K, tn), lambda i, j: (0, j)),
                pl.BlockSpec((1, tn), lambda i, j: (0, j)),
            ],
            out_specs=pl.BlockSpec((tm, tn), lambda i, j: (i, j)),
        ),
        compiler_params=pltpu.CompilerParams(
            dimension_semantics=("parallel", "parallel"),
            vmem_limit_bytes=_VMEM_LIMIT),
    )(xp, wp, bp)
    if Mp != M or Np != N:
        out = out[:M, :N]
    return out


# ---------------------------------------------------------------------------
# Kernel 3: fused 1x1-spatial tail:
#   encoder Conv(256->512, 3x3 on 3x3), encoder FC, decoder FC (ReLU), and the
#   decoder's first ConvTranspose (1x1 -> 3x3, stride 2) which is a pure GEMM.
#   The tiny (B, 512) activation never leaves VMEM between the four GEMMs.
# ---------------------------------------------------------------------------
def _tail_kernel(x_ref, w1_ref, b1_ref, w2_ref, b2_ref, w3_ref, b3_ref,
                 w4_ref, b4_ref, o_ref):
    f32 = jnp.float32
    h = jnp.dot(x_ref[...], w1_ref[...], preferred_element_type=f32) + b1_ref[...]
    h = jnp.maximum(h, 0.0)                                   # e3c2 + ReLU
    h = jnp.dot(h.astype(jnp.bfloat16), w2_ref[...], preferred_element_type=f32)
    h = h + b2_ref[...]                                       # encoder fc (no act)
    h = jnp.dot(h.astype(jnp.bfloat16), w3_ref[...], preferred_element_type=f32)
    h = jnp.maximum(h + b3_ref[...], 0.0)                     # decoder fc + ReLU
    h = jnp.dot(h.astype(jnp.bfloat16), w4_ref[...], preferred_element_type=f32)
    h = jnp.maximum(h + b4_ref[...], 0.0)                     # d1t1 + ReLU
    o_ref[...] = h.astype(o_ref.dtype)


def tail_fused(x9, pp, out_dtype=jnp.bfloat16):
    """x9: (B, 9*256) bf16  ->  (B, 9*512) bf16 (decoder's 3x3x512 map)."""
    w1, b1 = pp["t_e3c2"]
    w2, b2 = pp["t_efc"]
    w3, b3 = pp["t_dfc"]
    w4, b4 = pp["t_d1t1"]
    args = (x9, w1, b1, w2, b2, w3, b3, w4, b4)
    in_specs = [pl.BlockSpec(a.shape, lambda i: (0, 0)) for a in args]
    B = x9.shape[0]
    N = w4.shape[1]
    return pl.pallas_call(
        _tail_kernel,
        out_shape=jax.ShapeDtypeStruct((B, N), out_dtype),
        grid_spec=pltpu.PrefetchScalarGridSpec(
            num_scalar_prefetch=0,
            grid=(1,),
            in_specs=in_specs,
            out_specs=pl.BlockSpec((B, N), lambda i: (0, 0)),
        ),
        compiler_params=pltpu.CompilerParams(
            dimension_semantics=("arbitrary",),
            vmem_limit_bytes=_VMEM_LIMIT),
    )(*args)


# ---------------------------------------------------------------------------
# XLA glue (im2col for the two stride-2 convs, pooling, upsampling, dilation).
# ---------------------------------------------------------------------------
def _im2col(x, kh, kw, stride):
    B, H, W, C = x.shape
    Ho = (H - kh) // stride + 1
    Wo = (W - kw) // stride + 1
    cols = []
    for ki in range(kh):
        for kj in range(kw):
            cols.append(x[:, ki:ki + (Ho - 1) * stride + 1:stride,
                          kj:kj + (Wo - 1) * stride + 1:stride, :])
    patches = jnp.stack(cols, axis=3)                 # (B, Ho, Wo, kh*kw, C)
    return patches.reshape(B * Ho * Wo, kh * kw * C), (B, Ho, Wo)


def conv3x3_s2(x, wmat, b, apply_act, out_dtype=jnp.bfloat16):
    """Stride-2 VALID 3x3 conv via (small) im2col + Pallas GEMM."""
    Cout = wmat.shape[-1]
    patches, (B, Ho, Wo) = _im2col(x, 3, 3, 2)
    y = matmul_bias_act(patches, wmat, b, apply_act, out_dtype)
    return y.reshape(B, Ho, Wo, Cout)


def _dilate(x, s):
    if s == 1:
        return x
    B, H, W, C = x.shape
    out = jnp.zeros((B, (H - 1) * s + 1, (W - 1) * s + 1, C), x.dtype)
    return out.at[:, ::s, ::s, :].set(x)


def conv_transpose3x3(x, w9, b, stride, padding, output_padding, apply_act,
                      out_dtype=jnp.bfloat16):
    """ConvTranspose2d(3x3) as an equivalent forward conv on the (optionally
    dilated) zero-padded input; w9 is already spatially flipped / packed."""
    if stride > 1:
        x = _dilate(x, stride)
    pad = 2 - padding
    x = jnp.pad(x, ((0, 0), (pad, pad + output_padding),
                    (pad, pad + output_padding), (0, 0)))
    return conv3x3_s1(x, w9, b, apply_act, out_dtype)


def maxpool3x3_s2(x):
    # Elementwise max of 9 strided views; fuses in XLA, no (9, M, C) stack.
    B, H, W, C = x.shape
    Ho = (H - 3) // 2 + 1
    Wo = (W - 3) // 2 + 1
    y = None
    for ki in range(3):
        for kj in range(3):
            v = x[:, ki:ki + 2 * Ho - 1:2, kj:kj + 2 * Wo - 1:2, :]
            y = v if y is None else jnp.maximum(y, v)
    return y


def upsample_nearest_2x(x):
    return jnp.repeat(jnp.repeat(x, 2, axis=1), 2, axis=2)


# ---------------------------------------------------------------------------
# Full AutoEncoder forward (Dropout(0.25) is identity at inference).
# ---------------------------------------------------------------------------
def autoencoder_forward(pp, x_nchw):
    x = jnp.transpose(x_nchw, (0, 2, 3, 1)).astype(jnp.bfloat16)   # NCHW -> NHWC

    # ---------------- Encoder ----------------
    x = conv3x3_s1(x, *pp["e1c1"], apply_act=True)
    x = conv3x3_s2(x, *pp["e1c2"], apply_act=True)
    x = conv3x3_s1(x, *pp["e1c3"], apply_act=True)
    x = maxpool3x3_s2(x)
    x = conv3x3_s1(x, *pp["e2c1"], apply_act=True)
    x = conv3x3_s2(x, *pp["e2c2"], apply_act=True)
    x = conv3x3_s1(x, *pp["e2c3"], apply_act=True)
    x = maxpool3x3_s2(x)
    x = conv3x3_s1(x, *pp["e3c1"], apply_act=True)                 # (B, 3, 3, 256)

    # --------- fused tail: e3c2 -> encoder fc -> decoder fc -> d1t1 ---------
    B = x.shape[0]
    x9 = x.reshape(B, 9 * x.shape[-1])
    h = tail_fused(x9, pp)                                         # (B, 9*512)
    h = h.reshape(B, 3, 3, 512)

    # ---------------- Decoder ----------------
    h = upsample_nearest_2x(h)
    h = conv_transpose3x3(h, *pp["d1t2"], stride=1, padding=0, output_padding=0, apply_act=True)
    h = conv_transpose3x3(h, *pp["d1t3"], stride=2, padding=1, output_padding=0, apply_act=True)
    h = conv_transpose3x3(h, *pp["d2t1"], stride=2, padding=1, output_padding=0, apply_act=True)
    h = upsample_nearest_2x(h)
    h = conv_transpose3x3(h, *pp["d2t2"], stride=1, padding=0, output_padding=0, apply_act=True)
    h = conv_transpose3x3(h, *pp["d2t3"], stride=1, padding=0, output_padding=0, apply_act=True)
    h = conv_transpose3x3(h, *pp["d2t4"], stride=2, padding=0, output_padding=1, apply_act=True)
    h = conv_transpose3x3(h, *pp["d2t5"], stride=1, padding=0, output_padding=0, apply_act=True,
                          out_dtype=jnp.float32)

    return jnp.transpose(h, (0, 3, 1, 2))            # NHWC -> NCHW, (B, 3, 128, 128)


# ---------------------------------------------------------------------------
# Parameters: raw PyTorch-layout init + one-time packing (hoisted weight prep).
# ---------------------------------------------------------------------------
def init_params(key):
    ks = iter(jax.random.split(key, 64))

    def conv(cout, cin, k=3):
        kw, kb = jax.random.split(next(ks))
        fan_in = cin * k * k
        w = jax.random.normal(kw, (cout, cin, k, k), jnp.float32) * (2.0 / fan_in) ** 0.5
        b = jax.random.normal(kb, (cout,), jnp.float32) * 0.01
        return w, b

    def convT(cin, cout, k=3):
        kw, kb = jax.random.split(next(ks))
        fan_in = cin * k * k
        w = jax.random.normal(kw, (cin, cout, k, k), jnp.float32) * (2.0 / fan_in) ** 0.5
        b = jax.random.normal(kb, (cout,), jnp.float32) * 0.01
        return w, b

    def linear(cout, cin):
        kw, kb = jax.random.split(next(ks))
        w = jax.random.normal(kw, (cout, cin), jnp.float32) * (1.0 / cin) ** 0.5
        b = jax.random.normal(kb, (cout,), jnp.float32) * 0.01
        return w, b

    return {
        "e1c1": conv(32, 3), "e1c2": conv(64, 32), "e1c3": conv(64, 64),
        "e2c1": conv(128, 64), "e2c2": conv(256, 128), "e2c3": conv(256, 256),
        "e3c1": conv(256, 256), "e3c2": conv(512, 256),
        "e_fc": linear(512, 512),
        "d_fc": linear(512, 512),
        "d1t1": convT(512, 512), "d1t2": convT(512, 256), "d1t3": convT(256, 256),
        "d2t1": convT(256, 128), "d2t2": convT(128, 64), "d2t3": convT(64, 64),
        "d2t4": convT(64, 32), "d2t5": convT(32, 3),
    }


def pack_params(p):
    """One-time weight preparation (bf16 cast + layout packing), kept OUTSIDE
    the jitted forward so nothing is recast / reshuffled per call."""
    bf = jnp.bfloat16

    def bias(b):
        return b.reshape(1, -1).astype(jnp.float32)

    def conv_pack(wb):                       # Conv2d (Cout,Cin,3,3) -> (9,Cin,Cout)
        w, b = wb
        cout, cin = w.shape[0], w.shape[1]
        w9 = jnp.transpose(w, (2, 3, 1, 0)).reshape(9, cin, cout)
        if cin < 8:                          # keep MXU K-dim >= 8 (first layer, Cin=3)
            w9 = jnp.pad(w9, ((0, 0), (0, 8 - cin), (0, 0)))
        return w9.astype(bf), bias(b)

    def conv_mat(wb):                        # Conv2d -> (9*Cin, Cout) GEMM weight
        w, b = wb
        cout, cin = w.shape[0], w.shape[1]
        wm = jnp.transpose(w, (2, 3, 1, 0)).reshape(9 * cin, cout)
        return wm.astype(bf), bias(b)

    def convT_pack(wb):                      # ConvTranspose2d (Cin,Cout,3,3) -> flipped (9,Cin,Cout)
        w, b = wb
        cin, cout = w.shape[0], w.shape[1]
        w9 = jnp.transpose(jnp.flip(w, (2, 3)), (2, 3, 0, 1)).reshape(9, cin, cout)
        return w9.astype(bf), bias(b)

    def linear_pack(wb):                     # Linear (out,in) -> (in,out)
        w, b = wb
        return w.T.astype(bf), bias(b)

    def d1t1_pack(wb):                       # ConvT(512,512,s2) on 1x1 input == GEMM
        w, b = wb                            # (Cin, Cout, 3, 3)
        cin, cout = w.shape[0], w.shape[1]
        wm = jnp.transpose(w, (0, 2, 3, 1)).reshape(cin, 9 * cout)
        bt = jnp.tile(b.reshape(1, 1, cout), (1, 9, 1)).reshape(1, 9 * cout)
        return wm.astype(bf), bt.astype(jnp.float32)

    return {
        "e1c1": conv_pack(p["e1c1"]), "e1c2": conv_mat(p["e1c2"]), "e1c3": conv_pack(p["e1c3"]),
        "e2c1": conv_pack(p["e2c1"]), "e2c2": conv_mat(p["e2c2"]), "e2c3": conv_pack(p["e2c3"]),
        "e3c1": conv_pack(p["e3c1"]),
        "t_e3c2": conv_mat(p["e3c2"]),
        "t_efc": linear_pack(p["e_fc"]),
        "t_dfc": linear_pack(p["d_fc"]),
        "t_d1t1": d1t1_pack(p["d1t1"]),
        "d1t2": convT_pack(p["d1t2"]), "d1t3": convT_pack(p["d1t3"]),
        "d2t1": convT_pack(p["d2t1"]), "d2t2": convT_pack(p["d2t2"]), "d2t3": convT_pack(p["d2t3"]),
        "d2t4": convT_pack(p["d2t4"]), "d2t5": convT_pack(p["d2t5"]),
    }


# ---------------------------------------------------------------------------
# Quick layout/correctness guard for the fused-tap conv vs lax.conv (generous
# tolerance: only catches tap-offset / weight-packing bugs, not bf16 noise).
# ---------------------------------------------------------------------------
def _self_check_conv():
    k1, k2, k3 = jax.random.split(jax.random.PRNGKey(42), 3)
    x = jax.random.normal(k1, (2, 40, 40, 16), jnp.float32)
    w = jax.random.normal(k2, (24, 16, 3, 3), jnp.float32) * 0.06
    b = jax.random.normal(k3, (24,), jnp.float32) * 0.01
    w9 = jnp.transpose(w, (2, 3, 1, 0)).reshape(9, 16, 24).astype(jnp.bfloat16)
    got = conv3x3_s1(x.astype(jnp.bfloat16), w9, b.reshape(1, -1),
                     apply_act=True, out_dtype=jnp.float32)
    ref = jax.lax.conv_general_dilated(
        x.astype(jnp.bfloat16).astype(jnp.float32),
        jnp.transpose(w, (2, 3, 1, 0)).astype(jnp.bfloat16).astype(jnp.float32),
        window_strides=(1, 1), padding="VALID",
        dimension_numbers=("NHWC", "HWIO", "NHWC"))
    ref = jnp.maximum(ref + b.reshape(1, 1, 1, -1), 0.0)
    err = float(jnp.max(jnp.abs(got - ref)))
    assert err < 0.2, err


if __name__ == "__main__":
    _self_check_conv()

    root = jax.random.PRNGKey(0)
    pkey, xkey = jax.random.split(root)
    raw_params = init_params(pkey)
    params = pack_params(raw_params)                  # hoisted, once
    jax.tree_util.tree_map(lambda a: a.block_until_ready(), params)

    # The encoder's x.view(-1, 512) requires the conv/pool stack to collapse the
    # spatial dims to exactly 1x1, which pins the input to 128x128.
    x = jax.random.normal(xkey, (2, 3, 128, 128), jnp.float32)
    fwd = jax.jit(autoencoder_forward)
    out = jax.block_until_ready(fwd(params, x))
    assert out.shape == (2, 3, 128, 128), out.shape
    assert bool(jnp.all(jnp.isfinite(out)))
    print("KERNEL_OK")
</pallas_src>

<mosaic_0001>
module attributes {stable_mosaic.version = 11 : i64} {
  func.func @_fused_conv_kernel(%arg0: i32, %arg1: i32, %arg2: memref<1x1632x16xbf16, #tpu.memory_space<vmem>>, %arg3: memref<9x16x24xbf16, #tpu.memory_space<vmem>>, %arg4: memref<1x24xf32, #tpu.memory_space<vmem>>, %arg5: memref<1x384x24xf32, #tpu.memory_space<vmem>>) attributes {dimension_semantics = [#tpu.dimension_semantics<parallel>, #tpu.dimension_semantics<parallel>], iteration_bounds = array<i64: 2, 4>, scalar_prefetch = 0 : i64, scratch_operands = 0 : i64, tpu.core_type = #tpu.core_type<tc>, window_params = [{transform_indices = @transform_0, window_bounds = array<i64: 1, 1632, 16>}, {pipeline_mode = #tpu.pipeline_mode<synchronous>, transform_indices = @transform_1, window_bounds = array<i64: 9, 16, 24>}, {pipeline_mode = #tpu.pipeline_mode<synchronous>, transform_indices = @transform_2, window_bounds = array<i64: 1, 24>}, {transform_indices = @transform_3, window_bounds = array<i64: 1, 384, 24>}]} {
    %c384_i32 = arith.constant 384 : i32
    %0 = arith.muli %arg1, %c384_i32 : i32
    %1 = tpu.assume_multiple %0, 16 : i32
    %c0 = arith.constant 0 : index
    %2 = arith.index_cast %1 : i32 to index
    %c0_0 = arith.constant 0 : index
    %3 = vector.load %arg2[%c0, %2, %c0_0] : memref<1x1632x16xbf16, #tpu.memory_space<vmem>>, vector<1x480x16xbf16>
    %4 = vector.shape_cast %3 : vector<1x480x16xbf16> to vector<480x16xbf16>
    %5 = vector.extract_strided_slice %4 {offsets = [0, 0], sizes = [384, 16], strides = [1, 1]} : vector<480x16xbf16> to vector<384x16xbf16>
    %c0_1 = arith.constant 0 : index
    %c0_2 = arith.constant 0 : index
    %c0_3 = arith.constant 0 : index
    %6 = vector.load %arg3[%c0_1, %c0_2, %c0_3] : memref<9x16x24xbf16, #tpu.memory_space<vmem>>, vector<1x16x24xbf16>
    %7 = vector.shape_cast %6 : vector<1x16x24xbf16> to vector<16x24xbf16>
    %cst = arith.constant dense<0.000000e+00> : vector<384x24xf32>
    %8 = tpu.matmul %5, %7, %cst {dimension_numbers = #tpu.dot_dimension_numbers<[1], [0], [0], [1], [0, 0, 1, 1], [], []>} : vector<384x16xbf16>, vector<16x24xbf16>, vector<384x24xf32> -> vector<384x24xf32>
    %9 = vector.extract_strided_slice %4 {offsets = [1, 0], sizes = [384, 16], strides = [1, 1]} : vector<480x16xbf16> to vector<384x16xbf16>
    %c1 = arith.constant 1 : index
    %c0_4 = arith.constant 0 : index
    %c0_5 = arith.constant 0 : index
    %10 = vector.load %arg3[%c1, %c0_4, %c0_5] : memref<9x16x24xbf16, #tpu.memory_space<vmem>>, vector<1x16x24xbf16>
    %11 = vector.shape_cast %10 : vector<1x16x24xbf16> to vector<16x24xbf16>
    %cst_6 = arith.constant dense<0.000000e+00> : vector<384x24xf32>
    %12 = tpu.matmul %9, %11, %cst_6 {dimension_numbers = #tpu.dot_dimension_numbers<[1], [0], [0], [1], [0, 0, 1, 1], [], []>} : vector<384x16xbf16>, vector<16x24xbf16>, vector<384x24xf32> -> vector<384x24xf32>
    %13 = arith.addf %8, %12 : vector<384x24xf32>
    %14 = vector.extract_strided_slice %4 {offsets = [2, 0], sizes = [384, 16], strides = [1, 1]} : vector<480x16xbf16> to vector<384x16xbf16>
    %c2 = arith.constant 2 : index
    %c0_7 = arith.constant 0 : index
    %c0_8 = arith.constant 0 : index
    %15 = vector.load %arg3[%c2, %c0_7, %c0_8] : memref<9x16x24xbf16, #tpu.memory_space<vmem>>, vector<1x16x24xbf16>
    %16 = vector.shape_cast %15 : vector<1x16x24xbf16> to vector<16x24xbf16>
    %cst_9 = arith.constant dense<0.000000e+00> : vector<384x24xf32>
    %17 = tpu.matmul %14, %16, %cst_9 {dimension_numbers = #tpu.dot_dimension_numbers<[1], [0], [0], [1], [0, 0, 1, 1], [], []>} : vector<384x16xbf16>, vector<16x24xbf16>, vector<384x24xf32> -> vector<384x24xf32>
    %18 = arith.addf %13, %17 : vector<384x24xf32>
    %19 = vector.extract_strided_slice %4 {offsets = [40, 0], sizes = [384, 16], strides = [1, 1]} : vector<480x16xbf16> to vector<384x16xbf16>
    %c3 = arith.constant 3 : index
    %c0_10 = arith.constant 0 : index
    %c0_11 = arith.constant 0 : index
    %20 = vector.load %arg3[%c3, %c0_10, %c0_11] : memref<9x16x24xbf16, #tpu.memory_space<vmem>>, vector<1x16x24xbf16>
    %21 = vector.shape_cast %20 : vector<1x16x24xbf16> to vector<16x24xbf16>
    %cst_12 = arith.constant dense<0.000000e+00> : vector<384x24xf32>
    %22 = tpu.matmul %19, %21, %cst_12 {dimension_numbers = #tpu.dot_dimension_numbers<[1], [0], [0], [1], [0, 0, 1, 1], [], []>} : vector<384x16xbf16>, vector<16x24xbf16>, vector<384x24xf32> -> vector<384x24xf32>
    %23 = arith.addf %18, %22 : vector<384x24xf32>
    %24 = vector.extract_strided_slice %4 {offsets = [41, 0], sizes = [384, 16], strides = [1, 1]} : vector<480x16xbf16> to vector<384x16xbf16>
    %c4 = arith.constant 4 : index
    %c0_13 = arith.constant 0 : index
    %c0_14 = arith.constant 0 : index
    %25 = vector.load %arg3[%c4, %c0_13, %c0_14] : memref<9x16x24xbf16, #tpu.memory_space<vmem>>, vector<1x16x24xbf16>
    %26 = vector.shape_cast %25 : vector<1x16x24xbf16> to vector<16x24xbf16>
    %cst_15 = arith.constant dense<0.000000e+00> : vector<384x24xf32>
    %27 = tpu.matmul %24, %26, %cst_15 {dimension_numbers = #tpu.dot_dimension_numbers<[1], [0], [0], [1], [0, 0, 1, 1], [], []>} : vector<384x16xbf16>, vector<16x24xbf16>, vector<384x24xf32> -> vector<384x24xf32>
    %28 = arith.addf %23, %27 : vector<384x24xf32>
    %29 = vector.extract_strided_slice %4 {offsets = [42, 0], sizes = [384, 16], strides = [1, 1]} : vector<480x16xbf16> to vector<384x16xbf16>
    %c5 = arith.constant 5 : index
    %c0_16 = arith.constant 0 : index
    %c0_17 = arith.constant 0 : index
    %30 = vector.load %arg3[%c5, %c0_16, %c0_17] : memref<9x16x24xbf16, #tpu.memory_space<vmem>>, vector<1x16x24xbf16>
    %31 = vector.shape_cast %30 : vector<1x16x24xbf16> to vector<16x24xbf16>
    %cst_18 = arith.constant dense<0.000000e+00> : vector<384x24xf32>
    %32 = tpu.matmul %29, %31, %cst_18 {dimension_numbers = #tpu.dot_dimension_numbers<[1], [0], [0], [1], [0, 0, 1, 1], [], []>} : vector<384x16xbf16>, vector<16x24xbf16>, vector<384x24xf32> -> vector<384x24xf32>
    %33 = arith.addf %28, %32 : vector<384x24xf32>
    %34 = vector.extract_strided_slice %4 {offsets = [80, 0], sizes = [384, 16], strides = [1, 1]} : vector<480x16xbf16> to vector<384x16xbf16>
    %c6 = arith.constant 6 : index
    %c0_19 = arith.constant 0 : index
    %c0_20 = arith.constant 0 : index
    %35 = vector.load %arg3[%c6, %c0_19, %c0_20] : memref<9x16x24xbf16, #tpu.memory_space<vmem>>, vector<1x16x24xbf16>
    %36 = vector.shape_cast %35 : vector<1x16x24xbf16> to vector<16x24xbf16>
    %cst_21 = arith.constant dense<0.000000e+00> : vector<384x24xf32>
    %37 = tpu.matmul %34, %36, %cst_21 {dimension_numbers = #tpu.dot_dimension_numbers<[1], [0], [0], [1], [0, 0, 1, 1], [], []>} : vector<384x16xbf16>, vector<16x24xbf16>, vector<384x24xf32> -> vector<384x24xf32>
    %38 = arith.addf %33, %37 : vector<384x24xf32>
    %39 = vector.extract_strided_slice %4 {offsets = [81, 0], sizes = [384, 16], strides = [1, 1]} : vector<480x16xbf16> to vector<384x16xbf16>
    %c7 = arith.constant 7 : index
    %c0_22 = arith.constant 0 : index
    %c0_23 = arith.constant 0 : index
    %40 = vector.load %arg3[%c7, %c0_22, %c0_23] : memref<9x16x24xbf16, #tpu.memory_space<vmem>>, vector<1x16x24xbf16>
    %41 = vector.shape_cast %40 : vector<1x16x24xbf16> to vector<16x24xbf16>
    %cst_24 = arith.constant dense<0.000000e+00> : vector<384x24xf32>
    %42 = tpu.matmul %39, %41, %cst_24 {dimension_numbers = #tpu.dot_dimension_numbers<[1], [0], [0], [1], [0, 0, 1, 1], [], []>} : vector<384x16xbf16>, vector<16x24xbf16>, vector<384x24xf32> -> vector<384x24xf32>
    %43 = arith.addf %38, %42 : vector<384x24xf32>
    %44 = vector.extract_strided_slice %4 {offsets = [82, 0], sizes = [384, 16], strides = [1, 1]} : vector<480x16xbf16> to vector<384x16xbf16>
    %c8 = arith.constant 8 : index
    %c0_25 = arith.constant 0 : index
    %c0_26 = arith.constant 0 : index
    %45 = vector.load %arg3[%c8, %c0_25, %c0_26] : memref<9x16x24xbf16, #tpu.memory_space<vmem>>, vector<1x16x24xbf16>
    %46 = vector.shape_cast %45 : vector<1x16x24xbf16> to vector<16x24xbf16>
    %cst_27 = arith.constant dense<0.000000e+00> : vector<384x24xf32>
    %47 = tpu.matmul %44, %46, %cst_27 {dimension_numbers = #tpu.dot_dimension_numbers<[1], [0], [0], [1], [0, 0, 1, 1], [], []>} : vector<384x16xbf16>, vector<16x24xbf16>, vector<384x24xf32> -> vector<384x24xf32>
    %48 = arith.addf %43, %47 : vector<384x24xf32>
    %c0_28 = arith.constant 0 : index
    %c0_29 = arith.constant 0 : index
    %49 = vector.load %arg4[%c0_28, %c0_29] : memref<1x24xf32, #tpu.memory_space<vmem>>, vector<1x24xf32>
    %50 = vector.broadcast %49 : vector<1x24xf32> to vector<384x24xf32>
    %51 = arith.addf %48, %50 : vector<384x24xf32>
    %cst_30 = arith.constant 0.000000e+00 : f32
    %52 = vector.broadcast %cst_30 : f32 to vector<384x24xf32>
    %53 = arith.maximumf %51, %52 : vector<384x24xf32>
    %c0_31 = arith.constant 0 : index
    %c0_32 = arith.constant 0 : index
    %c0_33 = arith.constant 0 : index
    %54 = vector.load %arg5[%c0_31, %c0_32, %c0_33] : memref<1x384x24xf32, #tpu.memory_space<vmem>>, vector<1x384x24xf32>
    %55 = vector.shape_cast %54 : vector<1x384x24xf32> to vector<384x24xf32>
    %56 = vector.shape_cast %53 : vector<384x24xf32> to vector<1x384x24xf32>
    tpu.vector_store %arg5[%c0_31, %c0_32, %c0_33], %56 {strides = array<i32>} : memref<1x384x24xf32, #tpu.memory_space<vmem>>, vector<1x384x24xf32>,
    return
  }
  func.func @transform_0(%arg0: i32, %arg1: i32) -> (i32, i32, i32) {
    %c0_i32 = arith.constant 0 : i32
    %c0_i32_0 = arith.constant 0 : i32
    %c0_i32_1 = arith.constant 0 : i32
    return %arg0, %c0_i32, %c0_i32_0 : i32, i32, i32
  }
  func.func @transform_1(%arg0: i32, %arg1: i32) -> (i32, i32, i32) {
    %c0_i32 = arith.constant 0 : i32
    %c0_i32_0 = arith.constant 0 : i32
    %c0_i32_1 = arith.constant 0 : i32
    %c0_i32_2 = arith.constant 0 : i32
    return %c0_i32, %c0_i32_0, %c0_i32_1 : i32, i32, i32
  }
  func.func @transform_2(%arg0: i32, %arg1: i32) -> (i32, i32) {
    %c0_i32 = arith.constant 0 : i32
    %c0_i32_0 = arith.constant 0 : i32
    %c0_i32_1 = arith.constant 0 : i32
    return %c0_i32, %c0_i32_0 : i32, i32
  }
  func.func @transform_3(%arg0: i32, %arg1: i32) -> (i32, i32, i32) {
    %c0_i32 = arith.constant 0 : i32
    %c0_i32_0 = arith.constant 0 : i32
    return %arg0, %arg1, %c0_i32 : i32, i32, i32
  }
}

</mosaic_0001>

<bundles_post_ra>
// kernel: tpu_custom_call.1
= control target key start
LH: loop header
LB: loop body
LE: loop exit
PB: predicated region body
PF: predicated region fallthrough
CT: control target
= control target key end

     0   :  { %8 = vsyncpa [#allocation3], 0  ;;  %s7076_s0 = inlined_call_operand.vmem [shape: bf16[2,1632,16], index: 0, kind: input, shape index: {}]   ;;  %s7077_s1 = inlined_call_operand.hbm [shape: bf16[9,16,24], index: 1, kind: input, shape index: {}]   ;;  %s7078_s2 = inlined_call_operand.hbm [shape: f32[1,24], index: 2, kind: input, shape index: {}]   ;;  %s7079_s3 = inlined_call_operand.vmem [shape: f32[2,1536,24], index: 3, kind: output, shape index: {}]  }
   0x1   :  { %9 = vsyncpa [#allocation5], 0  ;;  %s5758_s12 = smov 0   ;;  %s5760_s13 = smov 0  }
   0x2   :  { %s5762_s14 = smov 0   ;;  %s5764_s15 = smov 0  }
   0x3   :  { %s5766_s16 = smov 0  }
   0x4 LB: > { %s4142_s17 = sadd.s32 4294967295, %s5732_s16   ;;  %s24_s18 = sadd.s32 1, %s5724_s14  ;;  %s5732_s16 = sphi %s5766_s16, %s15_s16   ;;  %s5728_s15 = sphi %s5764_s15, %s7176_s15   ;;  %s5724_s14 = sphi %s5762_s14, %s7175_s14   ;;  %s5720_s13 = sphi %s5760_s13, %s7174_s13   ;;  %s5716_s12 = sphi %s5758_s12, %s7173_s12  }
   0x5   : > { %p25_p0 = scmp.ge.s32.totalorder %s24_s18, 4  ;;  %s27_s19 = sadd.s32 1, %s5728_s15 }
   0x6   : > { %p4144_p1 = scmp.ge.s32.totalorder %s5732_s16, 1  ;;  %p128_p2 = scmp.lt.s32.totalorder %s5732_s16, 9 }
   0x7   : > { %s7178_s18 = smov (%p25_p0, %s24_s18), 0  ;;  %s7180_s19 = smov (!%p25_p0, %s27_s19), %s5728_s15 }
   0x8   : > { %p5791_p3 = pnand %p4144_p1, %p128_p2  ;;  %p29_p4 = scmp.ge.s32.totalorder %s7180_s19, 2 }
   0x9   : > { %p5795_p5 = scmp.eq.s32.totalorder %s4142_s17, 0  ;;  %s5734_s22 = smov [#allocation2]  }
   0xa   : > { %s7112_s20 = scalar_select %p5791_p3, 1, 0 }
   0xb   : > { %s7113_s21 = scalar_select %p5795_p5, 1, 0 }
   0xc   : > { %p5509_p6 = pneg %p5791_p3  ;;  %s7182_s19 = smov (%p29_p4, %s7180_s19), 0 }
   0xd   : > { %s140_s23 = sshll.u32 %s5734_s22, 4  ;;  %s5630_s27 = scalar_lea.hbm %s7077_s1, 1152  ;;  %s141_s23 = int_to_ptr.vmem [resolvable:$true] %s140_s23 }
   0xe   : > { %p5805_p7 = pnand %p5795_p5, %p5509_p6  ;;  %p5631_p8 = scmp.ne.s32.totalorder %s7077_s1, %s5630_s27 }
   0xf   : > { %p5637_p12 = scmp.lt.u32.totalorder %s5630_s27, %s7077_s1 }
  0x10   : > { %p5632_p9 = pneg %p5805_p7 }
  0x12   : > { %p5633_p10 = pnand %p5632_p9, %p5631_p8 }
  0x14   : > { %p5634_p11 = pneg %p5633_p10 }
  0x16   : > { %p5639_p13 = pnand %p5637_p12, %p5634_p11 }
  0x18   : > { %5642 = shalt.err (!%p5639_p13)
}
  0x19   : > { %s5643_s5 = scalar_lea.vmem %s141_s23, 1152  ;;  %p5651_p4 = scmp.lt.s32.totalorder %s141_s23, %s141_s23 }
  0x1a   : > { %p5644_p0 = scmp.ne.s32.totalorder %s141_s23, %s5643_s5  ;;  %p5652_p6 = scmp.lt.s32.totalorder %s5643_s5, %s5643_s5 }
  0x1c   : > { %p5646_p1 = pnand %p5644_p0, %p5632_p9  ;;  %p5653_p5 = por %p5652_p6, %p5651_p4 }
  0x1e   : > { %p5647_p2 = pneg %p5646_p1 }
  0x20   : > { %p5654_p3 = pnand %p5653_p5, %p5647_p2 }
  0x22   : > { %5657 = shalt.err (!%p5654_p3)
}
  0x23   : > { %s5735_s6 = smov 64   ;;  %s5736_s7 = smov 4  }
  0x24   : > { %5512 = dma.hbm_to_vmem [thread:$0]  (!%p5805_p7), %s7077_s1, 1152, %s141_s23, [#allocation3], %s5735_s6, %s5735_s6, %s5736_s7  }
  0x25   : > { %s5737_s10 = smov [#allocation4]   ;;  %s5658_s25 = scalar_lea.hbm %s7078_s2, 16 }
  0x26   : > { %s154_s11 = sshll.u32 %s5737_s10, 4  ;;  %p5659_p3 = scmp.ne.s32.totalorder %s7078_s2, %s5658_s25  ;;  %s155_s11 = int_to_ptr.vmem [resolvable:$true] %s154_s11 }
  0x27   : > { %p5665_p10 = scmp.lt.u32.totalorder %s5658_s25, %s7078_s2 }
  0x28   : > { %p5661_p5 = pnand %p5659_p3, %p5632_p9 }
  0x2a   : > { %p5662_p8 = pneg %p5661_p5 }
  0x2c   : > { %p5667_p11 = pnand %p5665_p10, %p5662_p8 }
  0x2e   : > { %5670 = shalt.err (!%p5667_p11)
}
  0x2f   : > { %s5671_s23 = scalar_lea.vmem %s155_s11, 16  ;;  %s5678_s30 = scalar_lea.vmem %s155_s11, 32 }
  0x30   : > { %p5672_p12 = scmp.ne.s32.totalorder %s155_s11, %s5671_s23  ;;  %p5679_p1 = scmp.lt.s32.totalorder %s155_s11, %s155_s11 }
  0x31   : > { %p5680_p2 = scmp.lt.s32.totalorder %s5678_s30, %s5671_s23 }
  0x32   : > { %p5674_p13 = pnand %p5672_p12, %p5632_p9 }
  0x33   : > { %p5681_p4 = por %p5680_p2, %p5679_p1 }
  0x34   : > { %p5675_p0 = pneg %p5674_p13 }
  0x36   : > { %p5682_p6 = pnand %p5681_p4, %p5675_p0 }
  0x38   : > { %5685 = shalt.err (!%p5682_p6)
}
  0x39   : > { %5515 = dma.hbm_to_vmem [thread:$0]  (!%p5805_p7), %s7078_s2, 16, %s155_s11, [#allocation5]  }
  0x3a   : > { %p7115_p3 = scmp.ne.s32.totalorder %s7112_s20, 0 }
  0x3c   : > { %175 = sbr.rel (%p7115_p3) target bundleno = 738 (0x2e2), region = 32 }
  0x43   : > { %p7116_p5 = scmp.ne.s32.totalorder %s7113_s21, 0 }
  0x45   : > { %5707 = dma.done.wait (%p7116_p5), [#allocation3], 1152  }
  0x46   : > { %5709 = vsyncadd (%p7116_p5), [#allocation3], 4294966144 }
  0x47   : > { %5711 = dma.done.wait (%p7116_p5), [#allocation5], 16  }
  0x48   : > { %5713 = vsyncadd (%p7116_p5), [#allocation5], 4294967280  ;;  %p207_p9 = scmp.lt.s32.totalorder %s5720_s13, 1  ;;  %s223_s24 = smul.u32 384, %s5716_s12  ;;  %v5564_v0 = vld [vmem:[#allocation2 + $0x8] sm:$0xff]   ;;  %v5872_v1 = vld [vmem:[#allocation2 + $0x20] sm:$0xff]  }
  0x49   : > { %7117 = vst [vmem:[#allocation8_spill] sm:$0xff] %v5872_v1  ;;  %4663 = vmatprep.subr.bf16.mxu1 %v5564_v0  ;;  %4863 = vmatprep.subr.bf16.mxu0 %v5872_v1  ;;  %vm415_vm0 = vsmask.f32 7424  ;;  %v5882_v4 = vld [vmem:[#allocation2] sm:$0xff]   ;;  %vm618_vm1 = vcmask 130048   ;;  %v5573_v20 = vld [vmem:[#allocation2 + $0x28] sm:$0xff]  }
  0x4a   : > { %s7184_s13 = smov (!%p207_p9, %s5720_s13), 1  ;;  %s224_s20 = sshra.s32 %s223_s24, 3  ;;  %4664 = vmatpush3.bf16.msra.mxu1 %v5564_v0  ;;  %4864 = vmatpush3.bf16.msra.mxu0 %v5872_v1  ;;  %v5933_v55 = vld [vmem:[#allocation2 + $0x30] sm:$0xff]   ;;  %vm1198_vm2 = vcmask 1046528   ;;  %vm3985_vm3 = vcmask 195584  }
  0x4b   : > { %s5499_s6 = smul.u32 816, %s7184_s13  ;;  %s4153_s7 = sshll.u32 %s224_s20, 2  ;;  %4713 = vmatprep.subr.bf16.mxu1 %v5882_v4  ;;  %4913 = vmatprep.subr.bf16.mxu0 %v5573_v20 }
  0x4c   : > { %s212_s21 = smul.u32 48, %s5716_s12 }
  0x4d   : > { %s211_s10 = scalar_lea.vmem %s7076_s0, %s5499_s6  ;;  %s5500_s17 = smul.u32 192, %s7184_s13 }
  0x4e   : > { %s5870_s11 = scalar_lea.vmem %s211_s10, %s4153_s7  ;;  %p215_p7 = scmp.lt.s32.totalorder %s212_s21, 191 }
  0x4f   : > { %v5876_v2 = vld [vmem:[%s5870_s11] sm:$0xff]   ;;  %v5879_v3 = vld [vmem:[%s5870_s11 + $0x8] sm:$0xff]   ;;  %v233_v9 = vld [vmem:[%s5870_s11 + $0x14] sm:$0xf] }
  0x50   : > { %v417_v5 = vshrl.u32 %v5876_v2, 16  ;;  %v419_v6 = vshll.u32 %v5876_v2, 16  ;;  %v424_v7 = vshll.u32 %v5879_v3, 16  ;;  %v428_v8 = vshrl.u32 %v5879_v3, 16  ;;  %v234_v10 = vld [vmem:[%s5870_s11 + $0x18] sm:$0xf] }
  0x51   : > { %v235_v11 = vld [vmem:[%s5870_s11 + $0x1c] sm:$0xf]  ;;  %v236_v12 = vld [vmem:[%s5870_s11 + $0x20] sm:$0xf]  ;;  %v237_v15 = vld [vmem:[%s5870_s11 + $0x24] sm:$0xf]  ;;  %v5896_v17 = vcombine.low %v233_v9, %v234_v10 }
  0x52   : > { %v421_v13 = vrot.slane %v419_v6, 1  ;;  %v426_v14 = vrot.slane %v424_v7, 1  ;;  %v5894_v16 = vcombine.low %v234_v10, %v235_v11  ;;  %v5898_v18 = vcombine.low %v236_v12, %v237_v15  ;;  %v232_v21 = vld [vmem:[%s5870_s11 + $0x10] sm:$0xf]  ;;  %v238_v26 = vld [vmem:[%s5870_s11 + $0x28] sm:$0xf] }
  0x53   : > { %7118 = vst [vmem:[#allocation9_spill] sm:$0xff] %v5896_v17  ;;  %v5900_v19 = vcombine.low %v235_v11, %v236_v12  ;;  %v1991_v24 = vshrl.u32 %v5896_v17, 16  ;;  %v1993_v25 = vshll.u32 %v5896_v17, 16  ;;  %v5908_v29 = vcombine.low %v232_v21, %v233_v9  ;;  %v239_v31 = vld [vmem:[%s5870_s11 + $0x2c] sm:$0xf]  ;;  %v5949_v10 = vld [vmem:[#allocation2 + $0x10] sm:$0xff]  }
  0x54   : > { %v422_v22 = vor.u32 %v421_v13, %v417_v5  ;;  %v430_v23 = vor.u32 %v428_v8, %v426_v14  ;;  %v5910_v30 = vcombine.low %v237_v15, %v238_v26  ;;  %v240_v32 = vld [vmem:[%s5870_s11 + $0x30] sm:$0xf]  ;;  %v440_v35 = vshll.u32 %v5894_v16, 16  ;;  %v241_v45 = vld [vmem:[%s5870_s11 + $0x34] sm:$0xf]  ;;  %s7186_s21 = smov (!%p215_p7, %s212_s21), 191 }
  0x55   : > { %7119 = vst [vmem:[#allocation10_spill] sm:$0xff] %v5900_v19  ;;  %v1997_v27 = vshll.u32 %v5900_v19, 16  ;;  %v2001_v28 = vshrl.u32 %v5900_v19, 16  ;;  %v1995_v34 = vrot.slane %v1993_v25, 1  ;;  %v5916_v36 = vcombine.low %v238_v26, %v239_v31  ;;  %v242_v50 = vld [vmem:[%s5870_s11 + $0x38] sm:$0xf]  ;;  %s218_s22 = sadd.s32 %s5500_s17, %s7186_s21 }
  0x56   : > { %7120 = vst [vmem:[#allocation11_spill] sm:$0xff] %v5910_v30  ;;  %v427_v33 = vsel %vm415_vm0, %v422_v22, %v426_v14  ;;  %v432_v38 = vshll.u32 %v5908_v29, 16  ;;  %v2004_v39 = vshll.u32 %v5910_v30, 16  ;;  %v436_v40 = vshrl.u32 %v5908_v29, 16  ;;  %v243_v0 = vld [vmem:[%s5870_s11 + $0x3c] sm:$0xf] }
  0x57   : > { %4665 = vmatprep.mubr.msk.bf16.mxu1 %vm618_vm1, %v427_v33  ;;  %v1999_v37 = vrot.slane %v1997_v27, 1  ;;  %v1996_v41 = vor.u32 %v1995_v34, %v1991_v24  ;;  %v442_v42 = vrot.slane %v440_v35, 1  ;;  %v5922_v43 = vcombine.low %v239_v31, %v240_v32  ;;  %v244_v5 = vld [vmem:[%s5870_s11 + $0x40] sm:$0xf]  ;;  %v246_v14 = vld [vmem:[%s5870_s11 + $0x48] sm:$0xf] }
  0x58   : > { %v2008_v44 = vshrl.u32 %v5910_v30, 16  ;;  %v434_v47 = vrot.slane %v432_v38, 1  ;;  %v2006_v48 = vrot.slane %v2004_v39, 1  ;;  %v444_v49 = vshrl.u32 %v5894_v16, 16  ;;  %v248_v33 = vld [vmem:[%s5870_s11 + $0x50] sm:$0xf] }
  0x59   : > { %7121 = vst [vmem:[#allocation12_spill] sm:$0xff] %v5922_v43  ;;  %v2003_v46 = vor.u32 %v2001_v28, %v1999_v37  ;;  %v2000_v51 = vsel %vm415_vm0, %v1996_v41, %v1999_v37  ;;  %v2011_v52 = vshll.u32 %v5922_v43, 16  ;;  %v448_v53 = vshll.u32 %v5898_v18, 16  ;;  %s4152_s25 = sshll.u32 %s218_s22, 3 }
  0x5a   : > { %v5931_v54 = vcombine.low %v240_v32, %v241_v45  ;;  %4865 = vmatprep.mubr.msk.bf16.mxu0 %vm618_vm1, %v2000_v51  ;;  %v435_v56 = vsel %vm415_vm0, %v430_v23, %v434_v47  ;;  %v438_v58 = vor.u32 %v436_v40, %v434_v47  ;;  %v2010_v59 = vor.u32 %v2008_v44, %v2006_v48  ;;  %v247_v23 = vld [vmem:[%s5870_s11 + $0x4c] sm:$0xf]  ;;  %s6900_s26 = scalar_lea.vmem %s7079_s3, %s4152_s25 }
  0x5b   : > { %v2007_v57 = vsel %vm415_vm0, %v2003_v46, %v2006_v48  ;;  %4666 = vmatmul.mubr.msk.bf16.vlgmr.msra.gmra.mrb[0].mxu1 %vm618_vm1, %v435_v56  ;;  %v2013_v60 = vrot.slane %v2011_v52, 1  ;;  %v446_v61 = vor.u32 %v444_v49, %v442_v42  ;;  %v450_v62 = vrot.slane %v448_v53, 1  ;;  %v249_v48 = vld [vmem:[%s5870_s11 + $0x54] sm:$0xf]  ;;  %v250_v49 = vld [vmem:[%s5870_s11 + $0x58] sm:$0xf] }
  0x5c   : > { %4866 = vmatmul.mubr.msk.bf16.vlgmr.msra.gmra.mrb[0].mxu0 %vm618_vm1, %v2007_v57  ;;  %v5940_v63 = vcombine.low %v241_v45, %v242_v50  ;;  %4714 = vmatpush3.bf16.msra.mxu1 %v5882_v4  ;;  %v443_v6 = vsel %vm415_vm0, %v438_v58, %v442_v42  ;;  %v2015_v7 = vshrl.u32 %v5922_v43, 16  ;;  %v452_v8 = vshrl.u32 %v5898_v18, 16  ;;  %v245_v4 = vld [vmem:[%s5870_s11 + $0x44] sm:$0xf] }
  0x5d   : > { %4914 = vmatpush3.bf16.msra.mxu0 %v5573_v20  ;;  %v456_v9 = vshll.u32 %v5916_v36, 16  ;;  %4669 = vmatprep.mubr.msk.bf16.mxu1 %vm618_vm1, %v443_v6  ;;  %v2014_v11 = vsel %vm415_vm0, %v2010_v59, %v2013_v60  ;;  %v5954_v13 = vcombine.low %v242_v50, %v243_v0  ;;  %v5960_v22 = vcombine.low %v243_v0, %v244_v5  ;;  %v252_v0 = vld [vmem:[%s5870_s11 + $0x60] sm:$0xf] }
  0x5e   : > { %7122 = vst [vmem:[#allocation13_spill] sm:$0xff] %v5940_v63  ;;  %v2018_v12 = vshll.u32 %v5940_v63, 16  ;;  %4963 = vmatprep.subr.bf16.mxu0 %v5933_v55  ;;  %4869 = vmatprep.mubr.msk.bf16.mxu0 %vm618_vm1, %v2014_v11  ;;  %v2017_v15 = vor.u32 %v2015_v7, %v2013_v60  ;;  %v454_v20 = vor.u32 %v452_v8, %v450_v62  ;;  %v2022_v25 = vshrl.u32 %v5940_v63, 16 }
  0x5f   : > { %v458_v21 = vrot.slane %v456_v9, 1  ;;  %7123 = vst [vmem:[#allocation14_spill] sm:$0xff] %v5960_v22  ;;  %4763 = vmatprep.subr.bf16.mxu1 %v5949_v10  ;;  %v460_v26 = vshrl.u32 %v5916_v36, 16  ;;  %v464_v27 = vshll.u32 %v5931_v54, 16  ;;  %v451_v28 = vsel %vm415_vm0, %v446_v61, %v450_v62  ;;  %v251_v62 = vld [vmem:[%s5870_s11 + $0x5c] sm:$0xf] }
  0x60   : > { %v2020_v24 = vrot.slane %v2018_v12, 1  ;;  %v2025_v31 = vshll.u32 %v5960_v22, 16  ;;  %v5969_v32 = vcombine.low %v245_v4, %v246_v14  ;;  %v5974_v38 = vcombine.low %v244_v5, %v245_v4 }
  0x61   : > { %v459_v35 = vsel %vm415_vm0, %v454_v20, %v458_v21  ;;  %v2029_v40 = vshrl.u32 %v5960_v22, 16  ;;  %v468_v42 = vshrl.u32 %v5931_v54, 16  ;;  %v462_v44 = vor.u32 %v460_v26, %v458_v21 }
  0x62   : > { %7124 = vst [vmem:[#allocation15_spill] sm:$0xff] %v5969_v32  ;;  %v2021_v34 = vsel %vm415_vm0, %v2017_v15, %v2020_v24  ;;  %v2024_v37 = vor.u32 %v2022_v25, %v2020_v24  ;;  %v2027_v39 = vrot.slane %v2025_v31, 1  ;;  %v2032_v41 = vshll.u32 %v5969_v32, 16  ;;  %v254_v24 = vld [vmem:[%s5870_s11 + $0x68] sm:$0xf] }
  0x63   : > { %4670 = vmatmul.mubr.msk.bf16.gmra.mrb[4].mxu1 %vm618_vm1, %v451_v28  ;;  %v466_v45 = vrot.slane %v464_v27, 1  ;;  %v472_v46 = vshll.u32 %v5954_v13, 16  ;;  %v5982_v47 = vcombine.low %v247_v23, %v248_v33  ;;  %v5988_v53 = vcombine.low %v246_v14, %v247_v23  ;;  %v253_v23 = vld [vmem:[%s5870_s11 + $0x64] sm:$0xf] }
  0x64   : > { %4870 = vmatmul.mubr.msk.bf16.gmra.mrb[4].mxu0 %vm618_vm1, %v2021_v34  ;;  %4673 = vmatprep.mubr.msk.bf16.mxu1 %vm618_vm1, %v459_v35  ;;  %v2028_v50 = vsel %vm415_vm0, %v2024_v37, %v2027_v39  ;;  %v2031_v51 = vor.u32 %v2029_v40, %v2027_v39  ;;  %v2034_v52 = vrot.slane %v2032_v41, 1  ;;  %v2036_v58 = vshrl.u32 %v5969_v32, 16  ;;  %v255_v40 = vld [vmem:[%s5870_s11 + $0x6c] sm:$0xf]  ;;  %v256_v41 = vld [vmem:[%s5870_s11 + $0x70] sm:$0xf] }
  0x65   : > { %7125 = vst [vmem:[#allocation16_spill] sm:$0xff] %v5982_v47  ;;  %4873 = vmatprep.mubr.msk.bf16.mxu0 %vm618_vm1, %v2028_v50  ;;  %v470_v56 = vor.u32 %v468_v42, %v466_v45  ;;  %v474_v57 = vrot.slane %v472_v46, 1  ;;  %v2039_v59 = vshll.u32 %v5982_v47, 16  ;;  %v480_v60 = vshll.u32 %v5974_v38, 16 }
  0x66   : > { %v5994_v61 = vcombine.low %v249_v48, %v250_v49  ;;  %v5999_v5 = vsel %vm415_vm0, %v462_v44, %v466_v45  ;;  %v2038_v6 = vor.u32 %v2036_v58, %v2034_v52  ;;  %v476_v8 = vshrl.u32 %v5954_v13, 16 }
  0x67   : > { %7127 = vst [vmem:[#allocation18_spill] sm:$0xff] %v5999_v5  ;;  %v2041_v7 = vrot.slane %v2039_v59, 1  ;;  %v2035_v9 = vsel %vm415_vm0, %v2031_v51, %v2034_v52  ;;  %v2043_v11 = vshrl.u32 %v5982_v47, 16  ;;  %v484_v4 = vshrl.u32 %v5974_v38, 16 }
  0x68   : > { %7126 = vst [vmem:[#allocation17_spill] sm:$0xff] %v5994_v61  ;;  %v2046_v12 = vshll.u32 %v5994_v61, 16  ;;  %v6007_v14 = vsel %vm415_vm0, %v470_v56, %v474_v57  ;;  %v488_v20 = vshll.u32 %v5988_v53, 16  ;;  %v6011_v21 = vcombine.low %v251_v62, %v252_v0  ;;  %v257_v56 = vld [vmem:[%s5870_s11 + $0x74] sm:$0xf] }
  0x69   : > { %7128 = vst [vmem:[#allocation19_spill] sm:$0xff] %v6007_v14  ;;  %v2042_v15 = vsel %vm415_vm0, %v2038_v6, %v2041_v7  ;;  %v482_v25 = vrot.slane %v480_v60, 1  ;;  %v6015_v26 = vcombine.low %v248_v33, %v249_v48  ;;  %v478_v27 = vor.u32 %v476_v8, %v474_v57  ;;  %v258_v57 = vld [vmem:[%s5870_s11 + $0x78] sm:$0xf] }
  0x6a   : > { %7129 = vst [vmem:[#allocation20_spill] sm:$0xff] %v6011_v21  ;;  %v2048_v28 = vrot.slane %v2046_v12, 1  ;;  %v2050_v31 = vshrl.u32 %v5994_v61, 16  ;;  %v2053_v34 = vshll.u32 %v6011_v21, 16  ;;  %v2045_v33 = vor.u32 %v2043_v11, %v2041_v7 }
  0x6b   : > { %4674 = vmatmul.mubr.msk.bf16.gmra.mrb[8].mxu1 %vm618_vm1, %v5999_v5  ;;  %v486_v35 = vor.u32 %v484_v4, %v482_v25  ;;  %v490_v37 = vrot.slane %v488_v20, 1  ;;  %v6025_v39 = vcombine.low %v253_v23, %v254_v24  ;;  %v6029_v42 = vcombine.low %v250_v49, %v251_v62 }
  0x6c   : > { %4874 = vmatmul.mubr.msk.bf16.gmra.mrb[8].mxu0 %vm618_vm1, %v2035_v9  ;;  %4677 = vmatprep.mubr.msk.bf16.mxu1 %vm618_vm1, %v6007_v14  ;;  %v2052_v44 = vor.u32 %v2050_v31, %v2048_v28  ;;  %v2055_v45 = vrot.slane %v2053_v34, 1  ;;  %v492_v46 = vshrl.u32 %v5988_v53, 16  ;;  %v6033_v48 = vsel %vm415_vm0, %v478_v27, %v482_v25 }
  0x6d   : > { %4877 = vmatprep.mubr.msk.bf16.mxu0 %vm618_vm1, %v2042_v15  ;;  %7130 = vst [vmem:[#allocation21_spill] sm:$0xff] %v6033_v48  ;;  %v496_v50 = vshll.u32 %v6015_v26, 16  ;;  %v2060_v51 = vshll.u32 %v6025_v39, 16  ;;  %v6037_v52 = vcombine.low %v255_v40, %v256_v41  ;;  %v2049_v58 = vsel %vm415_vm0, %v2045_v33, %v2048_v28 }
  0x6e   : > { %v6043_v49 = vsel %vm415_vm0, %v486_v35, %v490_v37  ;;  %v2057_v59 = vshrl.u32 %v6011_v21, 16  ;;  %v500_v60 = vshrl.u32 %v6015_v26, 16  ;;  %v2056_v62 = vsel %vm415_vm0, %v2052_v44, %v2055_v45 }
  0x6f   : > { %7131 = vst [vmem:[#allocation22_spill] sm:$0xff] %v6043_v49  ;;  %v504_v6 = vshll.u32 %v6029_v42, 16  ;;  %v2064_v7 = vshrl.u32 %v6025_v39, 16  ;;  %v2067_v8 = vshll.u32 %v6037_v52, 16  ;;  %v494_v9 = vor.u32 %v492_v46, %v490_v37 }
  0x70   : > { %v498_v11 = vrot.slane %v496_v50, 1  ;;  %v6054_v12 = vcombine.low %v252_v0, %v253_v23  ;;  %v2062_v4 = vrot.slane %v2060_v51, 1  ;;  %v2059_v15 = vor.u32 %v2057_v59, %v2055_v45  ;;  %v6076_v45 = vld [vmem:[%s5870_s11 + $0x7c] sm:$0xf] }
  0x71   : > { %v6059_v20 = vcombine.low %v254_v24, %v255_v40  ;;  %v6061_v25 = vcombine.low %v257_v56, %v258_v57  ;;  %v506_v28 = vrot.slane %v504_v6, 1  ;;  %v2069_v34 = vrot.slane %v2067_v8, 1 }
  0x72   : > { %v502_v27 = vor.u32 %v500_v60, %v498_v11  ;;  %v2066_v31 = vor.u32 %v2064_v7, %v2062_v4  ;;  %v6064_v33 = vsel %vm415_vm0, %v494_v9, %v498_v11  ;;  %v512_v0 = vshll.u32 %v6054_v12, 16 }
  0x73   : > { %4678 = vmatmul.mubr.msk.bf16.gmra.mrb[12].mxu1 %vm618_vm1, %v6033_v48  ;;  %7132 = vst [vmem:[#allocation23_spill] sm:$0xff] %v6064_v33  ;;  %v2063_v23 = vsel %vm415_vm0, %v2059_v15, %v2062_v4  ;;  %v508_v35 = vshrl.u32 %v6029_v42, 16  ;;  %v2071_v37 = vshrl.u32 %v6037_v52, 16  ;;  %v2074_v24 = vshll.u32 %v6061_v25, 16  ;;  %v6103_v15 = vld [vmem:[%s5870_s11 + $0x80] sm:$0xf] }
  0x74   : > { %4878 = vmatmul.mubr.msk.bf16.gmra.mrb[12].mxu0 %vm618_vm1, %v2049_v58  ;;  %4681 = vmatprep.mubr.msk.bf16.mxu1 %vm618_vm1, %v6043_v49  ;;  %v6072_v40 = vsel %vm415_vm0, %v502_v27, %v506_v28  ;;  %v2070_v44 = vsel %vm415_vm0, %v2066_v31, %v2069_v34  ;;  %v516_v46 = vshrl.u32 %v6054_v12, 16  ;;  %v520_v50 = vshll.u32 %v6059_v20, 16  ;;  %v6106_v27 = vld [vmem:[%s5870_s11 + $0x84] sm:$0xf]  ;;  %v6239_v49 = vld [vmem:[%s5870_s11 + $0xb8] sm:$0xf] }
  0x75   : > { %4881 = vmatprep.mubr.msk.bf16.mxu0 %vm618_vm1, %v2056_v62  ;;  %7133 = vst [vmem:[#allocation24_spill] sm:$0xff] %v6072_v40  ;;  %v514_v51 = vrot.slane %v512_v0, 1  ;;  %v6083_v58 = vcombine.low %v256_v41, %v257_v56  ;;  %v510_v59 = vor.u32 %v508_v35, %v506_v28  ;;  %v6089_v60 = vcombine.low %v258_v57, %v6076_v45  ;;  %v6118_v35 = vld [vmem:[%s5870_s11 + $0x8c] sm:$0xf] }
  0x76   : > { %v2073_v62 = vor.u32 %v2071_v37, %v2069_v34  ;;  %v6091_v6 = vrot.slane %v2074_v24, 1  ;;  %v522_v8 = vrot.slane %v520_v50, 1  ;;  %v2517_v41 = vrot.slane %v5896_v17, 1 }
  0x77   : > { %v518_v7 = vor.u32 %v516_v46, %v514_v51  ;;  %v2518_v56 = vrot.slane %v5900_v19, 1  ;;  %v528_v9 = vshll.u32 %v6083_v58, 16  ;;  %v6097_v11 = vsel %vm415_vm0, %v510_v59, %v514_v51 }
  0x78   : > { %7134 = vst [vmem:[#allocation25_spill] sm:$0xff] %v6091_v6  ;;  %7135 = vst [vmem:[#allocation26_spill] sm:$0xff] %v6097_v11  ;;  %v2077_v57 = vsel %vm415_vm0, %v2073_v62, %v6091_v6  ;;  %v524_v4 = vshrl.u32 %v6059_v20, 16  ;;  %v532_v34 = vshrl.u32 %v6083_v58, 16  ;;  %v536_v0 = vshll.u32 %v6089_v60, 16 }
  0x79   : > { %v6109_v28 = vsel %vm415_vm0, %v518_v7, %v522_v8  ;;  %v2519_v31 = vsel %vm1198_vm2, %v2517_v41, %v2518_v56  ;;  %v530_v37 = vrot.slane %v528_v9, 1  ;;  %v6125_v24 = vcombine.low %v6103_v15, %v6106_v27 }
  0x7a   : > { %7136 = vst [vmem:[#allocation27_spill] sm:$0xff] %v6109_v28  ;;  %v2520_v46 = vrot.slane %v5910_v30, 1  ;;  %v538_v51 = vrot.slane %v536_v0, 1  ;;  %v2522_v62 = vrot.slane %v5922_v43, 1  ;;  %v6155_v43 = vld [vmem:[%s5870_s11 + $0x98] sm:$0xf] }
  0x7b   : > { %4682 = vmatmul.mubr.msk.bf16.gmra.mrb[16].mxu1 %vm618_vm1, %v6064_v33  ;;  %v534_v50 = vor.u32 %v532_v34, %v530_v37  ;;  %v544_v7 = vshll.u32 %v6125_v24, 16  ;;  %v548_v34 = vshrl.u32 %v6125_v24, 16  ;;  %v2524_v30 = vrot.slane %v5940_v63, 1 }
  0x7c   : > { %4882 = vmatmul.mubr.msk.bf16.gmra.mrb[16].mxu0 %vm618_vm1, %v2063_v23  ;;  %4685 = vmatprep.mubr.msk.bf16.mxu1 %vm618_vm1, %v6072_v40  ;;  %v6115_v23 = vld [vmem:[%s5870_s11 + $0x88] sm:$0xf]  ;;  %v2521_v9 = vsel %vm1198_vm2, %v2518_v56, %v2520_v46  ;;  %v2523_v6 = vsel %vm1198_vm2, %v2520_v46, %v2522_v62  ;;  %v6160_v56 = vld [vmem:[#allocation2 + $0x38] sm:$0xff]   ;;  %v2538_v1 = vrot.slane %v6037_v52, 1 }
  0x7d   : > { %4885 = vmatprep.mubr.msk.bf16.mxu0 %vm618_vm1, %v2070_v44  ;;  %v526_v44 = vor.u32 %v524_v4, %v522_v8  ;;  %v6133_v59 = vcombine.low %v6115_v23, %v6118_v35  ;;  %v540_v8 = vshrl.u32 %v6089_v60, 16  ;;  %v6146_v4 = vld [vmem:[%s5870_s11 + $0x94] sm:$0xf] }
  0x7f   : > { %v6138_v41 = vsel %vm415_vm0, %v526_v44, %v530_v37  ;;  %v552_v0 = vshll.u32 %v6133_v59, 16  ;;  %v6158_v37 = vld [vmem:[%s5870_s11 + $0x9c] sm:$0xf]  ;;  %v546_v44 = vrot.slane %v544_v7, 1  ;;  %v542_v46 = vor.u32 %v540_v8, %v538_v51 }
  0x80   : > { %7137 = vst [vmem:[#allocation28_spill] sm:$0xff] %v6138_v41  ;;  %v6177_v17 = vcombine.low %v6155_v43, %v6158_v37  ;;  %v2525_v8 = vsel %vm1198_vm2, %v2522_v62, %v2524_v30 }
  0x81   : > { %v550_v19 = vor.u32 %v548_v34, %v546_v44  ;;  %v554_v7 = vrot.slane %v552_v0, 1  ;;  %v6187_v34 = vld [vmem:[%s5870_s11 + $0xa0] sm:$0xf]  ;;  %v6190_v0 = vld [vmem:[%s5870_s11 + $0xa4] sm:$0xf] }
  0x83   : > { %4686 = vmatmul.mubr.msk.bf16.gmra.mrb[20].mxu1 %vm618_vm1, %v6097_v11 }
  0x84   : > { %4886 = vmatmul.mubr.msk.bf16.gmra.mrb[20].mxu0 %vm618_vm1, %v2077_v57  ;;  %4689 = vmatprep.mubr.msk.bf16.mxu1 %vm618_vm1, %v6109_v28  ;;  %v6143_v57 = vld [vmem:[%s5870_s11 + $0x90] sm:$0xf]  ;;  %v6199_v28 = vld [vmem:[%s5870_s11 + $0xa8] sm:$0xf] }
  0x85   : > { %4915 = vmatprep.mubr.msk.bf16.mxu0 %vm618_vm1, %v2519_v31  ;;  %v6149_v31 = vsel %vm415_vm0, %v534_v50, %v538_v51  ;;  %v6167_v50 = vcombine.low %v6143_v57, %v6146_v4  ;;  %v6182_v51 = vsel %vm415_vm0, %v542_v46, %v546_v44  ;;  %v6202_v44 = vld [vmem:[%s5870_s11 + $0xac] sm:$0xf]  ;;  %v2528_v46 = vrot.slane %v5969_v32, 1  ;;  %v6230_v32 = vld [vmem:[%s5870_s11 + $0xb4] sm:$0xf] }
  0x86   : > { %7138 = vst [vmem:[#allocation29_spill] sm:$0xff] %v6149_v31  ;;  %7139 = vst [vmem:[#allocation30_spill] sm:$0xff] %v6182_v51 }
  0x8b   : > { %4690 = vmatmul.mubr.msk.bf16.gmra.mrb[24].mxu1 %vm618_vm1, %v6138_v41  ;;  %v568_v41 = vshll.u32 %v6177_v17, 16 }
  0x8c   : > { %4916 = vmatmul.mubr.msk.bf16.vlgmr.msra.gmra.mrb[0].mxu0 %vm618_vm1, %v2521_v9  ;;  %4693 = vmatprep.mubr.msk.bf16.mxu1 %vm618_vm1, %v6149_v31  ;;  %v2526_v9 = vrot.slane %v5960_v22, 1  ;;  %v6193_v22 = vsel %vm415_vm0, %v550_v19, %v554_v7  ;;  %v564_v31 = vshrl.u32 %v6167_v50, 16  ;;  %v6209_v19 = vcombine.low %v6187_v34, %v6190_v0 }
  0x8d   : > { %4964 = vmatpush3.bf16.msra.mxu0 %v5933_v55  ;;  %4919 = vmatprep.mubr.msk.bf16.mxu0 %vm618_vm1, %v2523_v6  ;;  %v560_v55 = vshll.u32 %v6167_v50, 16  ;;  %v556_v6 = vshrl.u32 %v6133_v59, 16  ;;  %7140 = vst [vmem:[#allocation31_spill] sm:$0xff] %v6193_v22  ;;  %v570_v11 = vrot.slane %v568_v41, 1 }
  0x8e   : > { %5013 = vmatprep.subr.bf16.mxu0 %v6160_v56  ;;  %v2527_v63 = vsel %vm1198_vm2, %v2524_v30, %v2526_v9  ;;  %v576_v40 = vshll.u32 %v6209_v19, 16 }
  0x8f   : > { %v562_v62 = vrot.slane %v560_v55, 1  ;;  %v558_v30 = vor.u32 %v556_v6, %v554_v7  ;;  %v6218_v55 = vcombine.low %v6199_v28, %v6202_v44  ;;  %v572_v7 = vshrl.u32 %v6177_v17, 16  ;;  %v6227_v6 = vld [vmem:[%s5870_s11 + $0xb0] sm:$0xf] }
  0x91   : > { %v6222_v33 = vsel %vm415_vm0, %v558_v30, %v562_v62  ;;  %v574_v30 = vor.u32 %v572_v7, %v570_v11 }
  0x92   : > { %7141 = vst [vmem:[#allocation32_spill] sm:$0xff] %v6222_v33 }
  0x93   : > { %4694 = vmatmul.mubr.msk.bf16.gmra.mrb[28].mxu1 %vm618_vm1, %v6182_v51  ;;  %v566_v51 = vor.u32 %v564_v31, %v562_v62  ;;  %v6242_v62 = vld [vmem:[%s5870_s11 + $0xbc] sm:$0xf] }
  0x94   : > { %4920 = vmatmul.mubr.msk.bf16.gmra.mrb[4].mxu0 %vm618_vm1, %v2525_v8  ;;  %4697 = vmatprep.mubr.msk.bf16.mxu1 %vm618_vm1, %v6193_v22  ;;  %v2530_v8 = vrot.slane %v5982_v47, 1  ;;  %v580_v47 = vshrl.u32 %v6209_v19, 16  ;;  %v584_v22 = vshll.u32 %v6218_v55, 16 }
  0x95   : > { %4923 = vmatprep.mubr.msk.bf16.mxu0 %vm618_vm1, %v2527_v63  ;;  %v2529_v63 = vsel %vm1198_vm2, %v2526_v9, %v2528_v46  ;;  %v6233_v41 = vsel %vm415_vm0, %v566_v51, %v570_v11  ;;  %v578_v9 = vrot.slane %v576_v40, 1  ;;  %v6249_v51 = vcombine.low %v6227_v6, %v6230_v32 }
  0x96   : > { %7142 = vst [vmem:[#allocation33_spill] sm:$0xff] %v6233_v41  ;;  %v2531_v31 = vsel %vm1198_vm2, %v2528_v46, %v2530_v8  ;;  %v2532_v46 = vrot.slane %v5994_v61, 1  ;;  %v586_v14 = vrot.slane %v584_v22, 1  ;;  %v6258_v40 = vcombine.low %v6239_v49, %v6242_v62 }
  0x97   : > { %v582_v48 = vor.u32 %v580_v47, %v578_v9  ;;  %v6262_v5 = vsel %vm415_vm0, %v574_v30, %v578_v9  ;;  %v596_v47 = vshrl.u32 %v6249_v51, 16 }
  0x98   : > { %7143 = vst [vmem:[#allocation34_spill] sm:$0xff] %v6262_v5  ;;  %v600_v7 = vshll.u32 %v6258_v40, 16 }
  0x99   : > { %v6267_v11 = vsel %vm415_vm0, %v582_v48, %v586_v14 }
  0x9a   : > { %v602_v61 = vrot.slane %v600_v7, 1 }
  0x9b   : > { %4698 = vmatmul.mubr.msk.bf16.gmra.mrb[32].mxu1 %vm618_vm1, %v6222_v33  ;;  %v2534_v33 = vrot.slane %v6011_v21, 1  ;;  %v6273_v21 = vld [vmem:[%s5870_s11 + $0xc0] sm:$0xf] }
  0x9c   : > { %4924 = vmatmul.mubr.msk.bf16.gmra.mrb[8].mxu0 %vm618_vm1, %v2529_v63  ;;  %4701 = vmatprep.mubr.msk.bf16.mxu1 %vm618_vm1, %v6233_v41  ;;  %v592_v63 = vshll.u32 %v6249_v51, 16  ;;  %v2533_v41 = vsel %vm1198_vm2, %v2530_v8, %v2532_v46  ;;  %v2536_v8 = vrot.slane %v6025_v39, 1  ;;  %v6284_v30 = vcombine.low %v6273_v21, %v6273_v21 }
  0x9d   : > { %4927 = vmatprep.mubr.msk.bf16.mxu0 %vm618_vm1, %v2531_v31  ;;  %v588_v31 = vshrl.u32 %v6218_v55, 16  ;;  %v2535_v22 = vsel %vm1198_vm2, %v2532_v46, %v2534_v33 }
  0x9e   : > { %v594_v9 = vrot.slane %v592_v63, 1  ;;  %v604_v63 = vshrl.u32 %v6258_v40, 16 }
  0x9f   : > { %v590_v48 = vor.u32 %v588_v31, %v586_v14  ;;  %v2539_v31 = vsel %vm1198_vm2, %v2536_v8, %v2538_v1 }
  0xa0   : > { %v598_v46 = vor.u32 %v596_v47, %v594_v9  ;;  %v6299_v47 = vcombine.low %v6076_v45, %v6103_v15 }
  0xa2   : > { %v6294_v14 = vsel %vm415_vm0, %v598_v46, %v602_v61  ;;  %v2542_v45 = vrot.slane %v6299_v47, 1 }
  0xa3   : > { %4702 = vmatmul.mubr.msk.bf16.gmra.mrb[36].mxu1 %vm618_vm1, %v6262_v5  ;;  %v6288_v5 = vsel %vm415_vm0, %v590_v48, %v594_v9  ;;  %v2540_v9 = vrot.slane %v6061_v25, 1 }
  0xa4   : > { %4928 = vmatmul.mubr.msk.bf16.gmra.mrb[12].mxu0 %vm618_vm1, %v2533_v41  ;;  %4705 = vmatprep.mubr.msk.bf16.mxu1 %vm618_vm1, %v6267_v11  ;;  %v2537_v41 = vsel %vm1198_vm2, %v2534_v33, %v2536_v8  ;;  %v6307_v33 = vor.u32 %v604_v63, %v602_v61  ;;  %v6316_v8 = vcombine.low %v6106_v27, %v6115_v23 }
  0xa5   : > { %4931 = vmatprep.mubr.msk.bf16.mxu0 %vm618_vm1, %v2535_v22  ;;  %v608_v22 = vshll.u32 %v6284_v30, 16  ;;  %v2541_v48 = vsel %vm1198_vm2, %v2538_v1, %v2540_v9  ;;  %v2543_v46 = vsel %vm1198_vm2, %v2540_v9, %v2542_v45  ;;  %v6322_v61 = vcombine.low %v6118_v35, %v6143_v57  ;;  %v278_v1 = vld [vmem:[%s5870_s11 + $0xc8] sm:$0xf]  ;;  %v280_v9 = vld [vmem:[%s5870_s11 + $0xd0] sm:$0xf] }
  0xa6   : > { %7144 = vst [vmem:[#allocation35_spill] sm:$0xff] %v6316_v8  ;;  %v2544_v27 = vrot.slane %v6316_v8, 1 }
  0xa7   : > { %v610_v7 = vrot.slane %v608_v22, 1  ;;  %v279_v22 = vld [vmem:[%s5870_s11 + $0xcc] sm:$0xf]  ;;  %v2546_v35 = vrot.slane %v6322_v61, 1 }
  0xa8   : > { %v6335_v23 = vcombine.low %v278_v1, %v279_v22  ;;  %v2545_v57 = vsel %vm1198_vm2, %v2542_v45, %v2544_v27 }
  0xa9   : > { %v611_v15 = vsel %vm415_vm0, %v6307_v33, %v610_v7  ;;  %v6345_v7 = vcombine.low %v6158_v37, %v6187_v34  ;;  %v6367_v34 = vcombine.low %v6190_v0, %v6199_v28 }
  0xab   : > { %4706 = vmatmul.mubr.msk.bf16.gmra.mrb[40].mxu1 %vm618_vm1, %v6288_v5 }
  0xac   : > { %4932 = vmatmul.mubr.msk.bf16.gmra.mrb[16].mxu0 %vm618_vm1, %v2537_v41  ;;  %4709 = vmatprep.mubr.msk.bf16.mxu1 %vm618_vm1, %v6294_v14  ;;  %v277_v41 = vld [vmem:[%s5870_s11 + $0xc4] sm:$0xf] }
  0xad   : > { %4935 = vmatprep.mubr.msk.bf16.mxu0 %vm618_vm1, %v2539_v31  ;;  %v6325_v63 = vcombine.low %v6273_v21, %v277_v41  ;;  %v6341_v31 = vcombine.low %v6146_v4, %v6155_v43  ;;  %v2550_v4 = vrot.slane %v6345_v7, 1 }
  0xaf   : > { %v2548_v43 = vrot.slane %v6341_v31, 1 }
  0xb1   : > { %v2549_v37 = vsel %vm1198_vm2, %v2546_v35, %v2548_v43  ;;  %v2551_v45 = vsel %vm1198_vm2, %v2548_v43, %v2550_v4 }
  0xb3   : > { %4710 = vmatmul.mubr.msk.bf16.gmra.mrb[44].mxu1 %vm618_vm1, %v611_v15  ;;  %v281_v15 = vld [vmem:[%s5870_s11 + $0xd4] sm:$0xf] }
  0xb4   : > { %4936 = vmatmul.mubr.msk.bf16.gmra.mrb[20].mxu0 %vm618_vm1, %v2541_v48  ;;  %4715 = vmatprep.mubr.msk.bf16.mxu1 %vm618_vm1, %v5876_v2  ;;  %v6349_v48 = vld [vmem:[#allocation2 + $0x18] sm:$0xff]   ;;  %v6352_v8 = vcombine.low %v280_v9, %v281_v15 }
  0xb5   : > { %4939 = vmatprep.mubr.msk.bf16.mxu0 %vm618_vm1, %v2543_v46  ;;  %v2547_v46 = vsel %vm1198_vm2, %v2544_v27, %v2546_v35  ;;  %v2552_v27 = vrot.slane %v6367_v34, 1 }
  0xb7   : > { %v2553_v0 = vsel %vm1198_vm2, %v2550_v4, %v2552_v27 }
  0xbb   : > { %4716 = vmatmul.mubr.msk.bf16.vlgmr.msra.gmra.mrb[0].mxu1 %vm618_vm1, %v5879_v3 }
  0xbc   : > { %4940 = vmatmul.mubr.msk.bf16.gmra.mrb[24].mxu0 %vm618_vm1, %v2545_v57  ;;  %4764 = vmatpush3.bf16.msra.mxu1 %v5949_v10  ;;  %v6372_v10 = vcombine.low %v6202_v44, %v6227_v6  ;;  %v6385_v44 = vcombine.low %v6230_v32, %v6239_v49  ;;  %v6389_v6 = vcombine.low %v6242_v62, %v6273_v21 }
  0xbd   : > { %4719 = vmatprep.mubr.msk.bf16.mxu1 %vm618_vm1, %v5908_v29  ;;  %4943 = vmatprep.mubr.msk.bf16.mxu0 %vm618_vm1, %v2547_v46  ;;  %v6401_v21 = vcombine.low %v277_v41, %v278_v1  ;;  %v6404_v46 = vcombine.low %v279_v22, %v280_v9  ;;  %v6415_v1 = vcombine.low %v281_v15, %v281_v15  ;;  %v6433_v15 = vld [vmem:[#allocation2 + $0x40] sm:$0xff]  }
  0xbe   : > { %4813 = vmatprep.subr.bf16.mxu1 %v6349_v48  ;;  %v2554_v28 = vrot.slane %v6372_v10, 1  ;;  %v2556_v57 = vrot.slane %v6385_v44, 1  ;;  %v2558_v32 = vrot.slane %v6389_v6, 1 }
  0xbf   : > { %v2560_v43 = vrot.slane %v6401_v21, 1  ;;  %v2562_v4 = vrot.slane %v6404_v46, 1  ;;  %v2564_v9 = vrot.slane %v6415_v1, 1 }
  0xc0   : > { %v2555_v35 = vsel %vm1198_vm2, %v2552_v27, %v2554_v28  ;;  %v2557_v49 = vsel %vm1198_vm2, %v2554_v28, %v2556_v57  ;;  %v2559_v62 = vsel %vm1198_vm2, %v2556_v57, %v2558_v32  ;;  %v1202_v28 = vrot.slane %v5908_v29, 1  ;;  %v7145_v29 = vld [vmem:[#allocation8_spill] sm:$0xff] }
  0xc1   : > { %v2561_v41 = vsel %vm1198_vm2, %v2558_v32, %v2560_v43  ;;  %v2563_v22 = vsel %vm1198_vm2, %v2560_v43, %v2562_v4 }
  0xc3   : > { %4720 = vmatmul.mubr.msk.bf16.gmra.mrb[4].mxu1 %vm618_vm1, %v5894_v16 }
  0xc4   : > { %4944 = vmatmul.mubr.msk.bf16.gmra.mrb[28].mxu0 %vm618_vm1, %v2549_v37  ;;  %4723 = vmatprep.mubr.msk.bf16.mxu1 %vm618_vm1, %v5898_v18  ;;  %v2565_v37 = vsel %vm1198_vm2, %v2562_v4, %v2564_v9  ;;  %v6563_v9 = vld [vmem:[%s5870_s11 + $0xe0] sm:$0xff]  }
  0xc5   : > { %4947 = vmatprep.mubr.msk.bf16.mxu0 %vm618_vm1, %v2551_v45  ;;  %v1200_v45 = vrot.slane %v5879_v3, 1 }
  0xcb   : > { %4724 = vmatmul.mubr.msk.bf16.gmra.mrb[8].mxu1 %vm618_vm1, %v5916_v36 }
  0xcc   : > { %4948 = vmatmul.mubr.msk.bf16.gmra.mrb[32].mxu0 %vm618_vm1, %v2553_v0  ;;  %4727 = vmatprep.mubr.msk.bf16.mxu1 %vm618_vm1, %v5931_v54  ;;  %v1204_v0 = vrot.slane %v5894_v16, 1  ;;  %v1208_v16 = vrot.slane %v5916_v36, 1 }
  0xcd   : > { %4951 = vmatprep.mubr.msk.bf16.mxu0 %vm618_vm1, %v2555_v35  ;;  %v1206_v35 = vrot.slane %v5898_v18, 1  ;;  %v1210_v18 = vrot.slane %v5931_v54, 1 }
  0xce   : > { %v1205_v3 = vsel %vm1198_vm2, %v1202_v28, %v1204_v0 }
  0xcf   : > { %v1207_v57 = vsel %vm1198_vm2, %v1204_v0, %v1206_v35  ;;  %v1209_v32 = vsel %vm1198_vm2, %v1206_v35, %v1208_v16  ;;  %v7147_v0 = vld [vmem:[#allocation19_spill] sm:$0xff] }
  0xd3   : > { %4728 = vmatmul.mubr.msk.bf16.gmra.mrb[12].mxu1 %vm618_vm1, %v5954_v13 }
  0xd4   : > { %4952 = vmatmul.mubr.msk.bf16.gmra.mrb[36].mxu0 %vm618_vm1, %v2557_v49  ;;  %4731 = vmatprep.mubr.msk.bf16.mxu1 %vm618_vm1, %v5974_v38 }
  0xd5   : > { %4955 = vmatprep.mubr.msk.bf16.mxu0 %vm618_vm1, %v2559_v62 }
  0xdb   : > { %4732 = vmatmul.mubr.msk.bf16.gmra.mrb[16].mxu1 %vm618_vm1, %v5988_v53 }
  0xdc   : > { %4956 = vmatmul.mubr.msk.bf16.gmra.mrb[40].mxu0 %vm618_vm1, %v2561_v41  ;;  %4735 = vmatprep.mubr.msk.bf16.mxu1 %vm618_vm1, %v6015_v26  ;;  %v6547_v41 = vld [vmem:[%s5870_s11 + $0xd8] sm:$0xff]  }
  0xdd   : > { %4959 = vmatprep.mubr.msk.bf16.mxu0 %vm618_vm1, %v2563_v22 }
  0xe3   : > { %4736 = vmatmul.mubr.msk.bf16.gmra.mrb[20].mxu1 %vm618_vm1, %v6029_v42 }
  0xe4   : > { %4960 = vmatmul.mubr.msk.bf16.gmra.mrb[44].mxu0 %vm618_vm1, %v2565_v37  ;;  %4739 = vmatprep.mubr.msk.bf16.mxu1 %vm618_vm1, %v6054_v12 }
  0xe5   : > { %4965 = vmatprep.mubr.msk.bf16.mxu0 %vm618_vm1, %v5916_v36  ;;  %v1212_v36 = vrot.slane %v5954_v13, 1 }
  0xe7   : > { %v6515_v49 = vsel %vm1198_vm2, %v1210_v18, %v1212_v36 }
  0xeb   : > { %4740 = vmatmul.mubr.msk.bf16.gmra.mrb[24].mxu1 %vm618_vm1, %v6059_v20 }
  0xec   : > { %4966 = vmatmul.mubr.msk.bf16.vlgmr.msra.gmra.mrb[0].mxu0 %vm618_vm1, %v5931_v54  ;;  %4743 = vmatprep.mubr.msk.bf16.mxu1 %vm618_vm1, %v6083_v58  ;;  %v1214_v54 = vrot.slane %v5974_v38, 1 }
  0xed   : > { %5014 = vmatpush3.bf16.msra.mxu0 %v6160_v56  ;;  %4969 = vmatprep.mubr.msk.bf16.mxu0 %vm618_vm1, %v5954_v13  ;;  %v1199_v56 = vrot.slane %v5876_v2, 1  ;;  %v1203_v2 = vsel %vm1198_vm2, %v1200_v45, %v1202_v28  ;;  %v1216_v13 = vrot.slane %v5988_v53, 1 }
  0xee   : > { %5063 = vmatprep.subr.bf16.mxu0 %v6433_v15  ;;  %v6528_v62 = vsel %vm1198_vm2, %v1212_v36, %v1214_v54 }
  0xef   : > { %v1201_v27 = vsel %vm1198_vm2, %v1199_v56, %v1200_v45  ;;  %v6531_v43 = vsel %vm1198_vm2, %v1214_v54, %v1216_v13  ;;  %v1228_v45 = vrot.slane %v6089_v60, 1 }
  0xf3   : > { %4744 = vmatmul.mubr.msk.bf16.gmra.mrb[28].mxu1 %vm618_vm1, %v6089_v60 }
  0xf4   : > { %4970 = vmatmul.mubr.msk.bf16.gmra.mrb[4].mxu0 %vm618_vm1, %v5974_v38  ;;  %4747 = vmatprep.mubr.msk.bf16.mxu1 %vm618_vm1, %v6125_v24  ;;  %v1218_v38 = vrot.slane %v6015_v26, 1 }
  0xf5   : > { %4973 = vmatprep.mubr.msk.bf16.mxu0 %vm618_vm1, %v5988_v53  ;;  %v1220_v53 = vrot.slane %v6029_v42, 1 }
  0xf6   : > { %v6544_v4 = vsel %vm1198_vm2, %v1216_v13, %v1218_v38  ;;  %v7153_v13 = vld [vmem:[#allocation27_spill] sm:$0xff] }
  0xf7   : > { %v6550_v22 = vsel %vm1198_vm2, %v1218_v38, %v1220_v53  ;;  %v7154_v38 = vld [vmem:[#allocation28_spill] sm:$0xff] }
  0xfb   : > { %4748 = vmatmul.mubr.msk.bf16.gmra.mrb[32].mxu1 %vm618_vm1, %v6133_v59 }
  0xfc   : > { %4974 = vmatmul.mubr.msk.bf16.gmra.mrb[8].mxu0 %vm618_vm1, %v6015_v26  ;;  %4751 = vmatprep.mubr.msk.bf16.mxu1 %vm618_vm1, %v6167_v50  ;;  %v1222_v26 = vrot.slane %v6054_v12, 1 }
  0xfd   : > { %4977 = vmatprep.mubr.msk.bf16.mxu0 %vm618_vm1, %v6029_v42  ;;  %v1224_v42 = vrot.slane %v6059_v20, 1 }
  0xfe   : > { %v6566_v37 = vsel %vm1198_vm2, %v1220_v53, %v1222_v26 }
  0xff   : > { %v6569_v56 = vsel %vm1198_vm2, %v1222_v26, %v1224_v42 }
 0x103   : > { %4752 = vmatmul.mubr.msk.bf16.gmra.mrb[36].mxu1 %vm618_vm1, %v6177_v17 }
 0x104   : > { %4978 = vmatmul.mubr.msk.bf16.gmra.mrb[12].mxu0 %vm618_vm1, %v6054_v12  ;;  %4755 = vmatprep.mubr.msk.bf16.mxu1 %vm618_vm1, %v6209_v19  ;;  %v7146_v12 = vld [vmem:[#allocation18_spill] sm:$0xff] }
 0x105   : > { %4981 = vmatprep.mubr.msk.bf16.mxu0 %vm618_vm1, %v6059_v20  ;;  %v1226_v20 = vrot.slane %v6083_v58, 1 }
 0x107   : > { %v6585_v28 = vsel %vm1198_vm2, %v1226_v20, %v1228_v45 }
 0x10b   : > { %4756 = vmatmul.mubr.msk.bf16.gmra.mrb[40].mxu1 %vm618_vm1, %v6218_v55 }
 0x10c   : > { %4982 = vmatmul.mubr.msk.bf16.gmra.mrb[16].mxu0 %vm618_vm1, %v6083_v58  ;;  %4759 = vmatprep.mubr.msk.bf16.mxu1 %vm618_vm1, %v6249_v51  ;;  %v1230_v58 = vrot.slane %v6125_v24, 1 }
 0x10d   : > { %4985 = vmatprep.mubr.msk.bf16.mxu0 %vm618_vm1, %v6089_v60  ;;  %v7148_v60 = vld [vmem:[#allocation21_spill] sm:$0xff] }
 0x113   : > { %4760 = vmatmul.mubr.msk.bf16.gmra.mrb[44].mxu1 %vm618_vm1, %v6258_v40 }
 0x114   : > { %4986 = vmatmul.mubr.msk.bf16.gmra.mrb[20].mxu0 %vm618_vm1, %v6125_v24  ;;  %4765 = vmatprep.mubr.msk.bf16.mxu1 %vm618_vm1, %v1201_v27  ;;  %v6582_v27 = vsel %vm1198_vm2, %v1224_v42, %v1226_v20  ;;  %v7150_v24 = vld [vmem:[#allocation23_spill] sm:$0xff]  ;;  %v7155_v42 = vld [vmem:[#allocation29_spill] sm:$0xff] }
 0x115   : > { %4989 = vmatprep.mubr.msk.bf16.mxu0 %vm618_vm1, %v6133_v59  ;;  %v7157_v20 = vld [vmem:[#allocation31_spill] sm:$0xff] }
 0x11b   : > { %4766 = vmatmul.mubr.msk.bf16.vlgmr.msra.gmra.mrb[0].mxu1 %vm618_vm1, %v1203_v2  ;;  %v1232_v2 = vrot.slane %v6133_v59, 1  ;;  %v1234_v59 = vrot.slane %v6167_v50, 1 }
 0x11c   : > { %4990 = vmatmul.mubr.msk.bf16.gmra.mrb[24].mxu0 %vm618_vm1, %v6167_v50  ;;  %4814 = vmatpush3.bf16.msra.mxu1 %v6349_v48  ;;  %v6512_v48 = vsel %vm1198_vm2, %v1208_v16, %v1210_v18  ;;  %v1236_v16 = vrot.slane %v6177_v17, 1  ;;  %v7152_v18 = vld [vmem:[#allocation26_spill] sm:$0xff]  ;;  %v1240_v50 = vrot.slane %v6218_v55, 1 }
 0x11d   : > { %4769 = vmatprep.mubr.msk.bf16.mxu1 %vm618_vm1, %v1205_v3  ;;  %4993 = vmatprep.mubr.msk.bf16.mxu0 %vm618_vm1, %v6177_v17  ;;  %v6599_v3 = vsel %vm1198_vm2, %v1228_v45, %v1230_v58  ;;  %v6602_v35 = vsel %vm1198_vm2, %v1230_v58, %v1232_v2  ;;  %v1238_v17 = vrot.slane %v6209_v19, 1  ;;  %v7158_v45 = vld [vmem:[#allocation9_spill] sm:$0xff]  ;;  %v7160_v58 = vld [vmem:[#allocation10_spill] sm:$0xff] }
 0x11e   : > { %5113 = vmatprep.subr.bf16.mxu1 %v7145_v29  ;;  %v6615_v29 = vsel %vm1198_vm2, %v1232_v2, %v1234_v59  ;;  %v7162_v2 = vld [vmem:[#allocation11_spill] sm:$0xff] }
 0x11f   : > { %v6631_v36 = vsel %vm1198_vm2, %v1236_v16, %v1238_v17  ;;  %v6634_v54 = vsel %vm1198_vm2, %v1238_v17, %v1240_v50  ;;  %v3237_v17 = vshrl.u32 %v6325_v63, 16 }
 0x123   : > { %4770 = vmatmul.mubr.msk.bf16.gmra.mrb[4].mxu1 %vm618_vm1, %v1207_v57  ;;  %v6618_v57 = vsel %vm1198_vm2, %v1234_v59, %v1236_v16  ;;  %v7164_v59 = vld [vmem:[#allocation12_spill] sm:$0xff]  ;;  %v7165_v16 = vld [vmem:[#allocation13_spill] sm:$0xff] }
 0x124   : > { %4994 = vmatmul.mubr.msk.bf16.gmra.mrb[28].mxu0 %vm618_vm1, %v6209_v19  ;;  %4773 = vmatprep.mubr.msk.bf16.mxu1 %vm618_vm1, %v1209_v32  ;;  %v7151_v32 = vld [vmem:[#allocation24_spill] sm:$0xff]  ;;  %v1242_v19 = vrot.slane %v6249_v51, 1 }
 0x125   : > { %4997 = vmatprep.mubr.msk.bf16.mxu0 %vm618_vm1, %v6218_v55  ;;  %v6646_v55 = vrot.slane %v6258_v40, 1 }
 0x126   : > { %v6649_v53 = vsel %vm1198_vm2, %v1240_v50, %v1242_v19 }
 0x127   : > { %v6653_v26 = vsel %vm1198_vm2, %v1242_v19, %v6646_v55  ;;  %v7166_v19 = vld [vmem:[#allocation14_spill] sm:$0xff] }
 0x12b   : > { %4774 = vmatmul.mubr.msk.bf16.gmra.mrb[8].mxu1 %vm618_vm1, %v6512_v48 }
 0x12c   : > { %4998 = vmatmul.mubr.msk.bf16.gmra.mrb[32].mxu0 %vm618_vm1, %v6249_v51  ;;  %4777 = vmatprep.mubr.msk.bf16.mxu1 %vm618_vm1, %v6515_v49  ;;  %v7156_v51 = vld [vmem:[#allocation30_spill] sm:$0xff] }
 0x12d   : > { %5001 = vmatprep.mubr.msk.bf16.mxu0 %vm618_vm1, %v6258_v40  ;;  %v1246_v40 = vrot.slane %v6284_v30, 1  ;;  %v5629_v30 = vld [vmem:[#allocation2 + $0x20] sm:$0xff]  }
 0x133   : > { %4778 = vmatmul.mubr.msk.bf16.gmra.mrb[12].mxu1 %vm618_vm1, %v6528_v62 }
 0x134   : > { %5002 = vmatmul.mubr.msk.bf16.gmra.mrb[36].mxu0 %vm618_vm1, %v6325_v63  ;;  %4781 = vmatprep.mubr.msk.bf16.mxu1 %vm618_vm1, %v6531_v43 }
 0x135   : > { %5005 = vmatprep.mubr.msk.bf16.mxu0 %vm618_vm1, %v6335_v23 }
 0x13b   : > { %4782 = vmatmul.mubr.msk.bf16.gmra.mrb[16].mxu1 %vm618_vm1, %v6544_v4 }
 0x13c   : > { %5006 = vmatmul.mubr.msk.bf16.gmra.mrb[40].mxu0 %vm618_vm1, %v6352_v8  ;;  %4785 = vmatprep.mubr.msk.bf16.mxu1 %vm618_vm1, %v6550_v22 }
 0x13d   : > { %5009 = vmatprep.mubr.msk.bf16.mxu0 %vm618_vm1, %v6547_v41 }
 0x143   : > { %4786 = vmatmul.mubr.msk.bf16.gmra.mrb[20].mxu1 %vm618_vm1, %v6566_v37 }
 0x144   : > { %5010 = vmatmul.mubr.msk.bf16.gmra.mrb[44].mxu0 %vm618_vm1, %v6563_v9  ;;  %4789 = vmatprep.mubr.msk.bf16.mxu1 %vm618_vm1, %v6569_v56 }
 0x145   : > { %5015 = vmatprep.mubr.msk.bf16.mxu0 %vm618_vm1, %v7146_v12  ;;  %v1247_v12 = vsel %vm1198_vm2, %v6646_v55, %v1246_v40  ;;  %v3254_v40 = vshll.u32 %v6547_v41, 16 }
 0x14b   : > { %4790 = vmatmul.mubr.msk.bf16.gmra.mrb[24].mxu1 %vm618_vm1, %v6582_v27 }
 0x14c   : > { %5016 = vmatmul.mubr.msk.bf16.vlgmr.msra.gmra.mrb[0].mxu0 %vm618_vm1, %v7147_v0  ;;  %4793 = vmatprep.mubr.msk.bf16.mxu1 %vm618_vm1, %v6585_v28  ;;  %v7159_v0 = vld [vmem:[#allocation32_spill] sm:$0xff] }
 0x14d   : > { %5064 = vmatpush3.bf16.msra.mxu0 %v6433_v15  ;;  %5019 = vmatprep.mubr.msk.bf16.mxu0 %vm618_vm1, %v7148_v60  ;;  %v7149_v15 = vld [vmem:[#allocation22_spill] sm:$0xff]  ;;  %v7161_v60 = vld [vmem:[#allocation33_spill] sm:$0xff] }
 0x153   : > { %4794 = vmatmul.mubr.msk.bf16.gmra.mrb[28].mxu1 %vm618_vm1, %v6599_v3 }
 0x154   : > { %5020 = vmatmul.mubr.msk.bf16.gmra.mrb[4].mxu0 %vm618_vm1, %v7149_v15  ;;  %4797 = vmatprep.mubr.msk.bf16.mxu1 %vm618_vm1, %v6602_v35  ;;  %v7163_v15 = vld [vmem:[#allocation34_spill] sm:$0xff] }
 0x155   : > { %5023 = vmatprep.mubr.msk.bf16.mxu0 %vm618_vm1, %v7150_v24  ;;  %v3233_v24 = vshll.u32 %v6325_v63, 16 }
 0x15b   : > { %4798 = vmatmul.mubr.msk.bf16.gmra.mrb[32].mxu1 %vm618_vm1, %v6615_v29 }
 0x15c   : > { %5024 = vmatmul.mubr.msk.bf16.gmra.mrb[8].mxu0 %vm618_vm1, %v7151_v32  ;;  %4801 = vmatprep.mubr.msk.bf16.mxu1 %vm618_vm1, %v6618_v57  ;;  %v3235_v32 = vrot.slane %v3233_v24, 1 }
 0x15d   : > { %5027 = vmatprep.mubr.msk.bf16.mxu0 %vm618_vm1, %v7152_v18  ;;  %v3240_v18 = vshll.u32 %v6335_v23, 16 }
 0x15e   : > { %v3236_v50 = vsel %vm415_vm0, %v6307_v33, %v3235_v32 }
 0x163   : > { %4802 = vmatmul.mubr.msk.bf16.gmra.mrb[36].mxu1 %vm618_vm1, %v6631_v36 }
 0x164   : > { %5028 = vmatmul.mubr.msk.bf16.gmra.mrb[12].mxu0 %vm618_vm1, %v7153_v13  ;;  %4805 = vmatprep.mubr.msk.bf16.mxu1 %vm618_vm1, %v6634_v54  ;;  %v3244_v13 = vshrl.u32 %v6335_v23, 16 }
 0x165   : > { %5031 = vmatprep.mubr.msk.bf16.mxu0 %vm618_vm1, %v7154_v38  ;;  %v3247_v38 = vshll.u32 %v6352_v8, 16 }
 0x167   : > { %v3249_v33 = vrot.slane %v3247_v38, 1 }
 0x16b   : > { %4806 = vmatmul.mubr.msk.bf16.gmra.mrb[40].mxu1 %vm618_vm1, %v6649_v53 }
 0x16c   : > { %5032 = vmatmul.mubr.msk.bf16.gmra.mrb[16].mxu0 %vm618_vm1, %v7155_v42  ;;  %4809 = vmatprep.mubr.msk.bf16.mxu1 %vm618_vm1, %v6653_v26  ;;  %v3239_v42 = vor.u32 %v3237_v17, %v3235_v32  ;;  %v3265_v32 = vshrl.u32 %v6563_v9, 16 }
 0x16d   : > { %5035 = vmatprep.mubr.msk.bf16.mxu0 %vm618_vm1, %v7156_v51 }
 0x173   : > { %4810 = vmatmul.mubr.msk.bf16.gmra.mrb[44].mxu1 %vm618_vm1, %v1247_v12 }
 0x174   : > { %5036 = vmatmul.mubr.msk.bf16.gmra.mrb[20].mxu0 %vm618_vm1, %v7157_v20  ;;  %4815 = vmatprep.mubr.msk.bf16.mxu1 %vm618_vm1, %v7158_v45  ;;  %v3251_v20 = vshrl.u32 %v6352_v8, 16 }
 0x175   : > { %5039 = vmatprep.mubr.msk.bf16.mxu0 %vm618_vm1, %v7159_v0  ;;  %v3261_v0 = vshll.u32 %v6563_v9, 16 }
 0x17b   : > { %4816 = vmatmul.mubr.msk.bf16.vlgmr.msra.gmra.mrb[0].mxu1 %vm618_vm1, %v7160_v58  ;;  %v7168_v58 = vld [vmem:[#allocation16_spill] sm:$0xff] }
 0x17c   : > { %5040 = vmatmul.mubr.msk.bf16.gmra.mrb[24].mxu0 %vm618_vm1, %v7161_v60  ;;  %5114 = vmatpush3.bf16.msra.mxu1 %v5629_v30  ;;  %v3256_v60 = vrot.slane %v3254_v40, 1  ;;  %v7169_v30 = vld [vmem:[#allocation17_spill] sm:$0xff] }
 0x17d   : > { %4819 = vmatprep.mubr.msk.bf16.mxu1 %vm618_vm1, %v7162_v2  ;;  %5043 = vmatprep.mubr.msk.bf16.mxu0 %vm618_vm1, %v7163_v15  ;;  %v3253_v2 = vor.u32 %v3251_v20, %v3249_v33  ;;  %v6716_v15 = vld [vmem:[%s5870_s11 + $0xe8] ss:$0 sps:$4 sm:$0xff]   ;;  %v2116_v20 = vshll.u32 %v6367_v34, 16 }
 0x183   : > { %4820 = vmatmul.mubr.msk.bf16.gmra.mrb[4].mxu1 %vm618_vm1, %v7164_v59  ;;  %v3263_v59 = vrot.slane %v3261_v0, 1  ;;  %v2120_v0 = vshrl.u32 %v6367_v34, 16 }
 0x184   : > { %5044 = vmatmul.mubr.msk.bf16.gmra.mrb[28].mxu0 %vm618_vm1, %v6267_v11  ;;  %4823 = vmatprep.mubr.msk.bf16.mxu1 %vm618_vm1, %v7165_v16  ;;  %v3242_v11 = vrot.slane %v3240_v18, 1  ;;  %v3257_v16 = vsel %vm415_vm0, %v3253_v2, %v3256_v60  ;;  %v3269_v18 = vshll.u32 %v6716_v15, 16 }
 0x185   : > { %5047 = vmatprep.mubr.msk.bf16.mxu0 %vm618_vm1, %v6288_v5  ;;  %v7167_v5 = vld [vmem:[#allocation15_spill] sm:$0xff] }
 0x186   : > { %v3246_v51 = vor.u32 %v3244_v13, %v3242_v11  ;;  %v3243_v12 = vsel %vm415_vm0, %v3239_v42, %v3242_v11  ;;  %v3267_v13 = vor.u32 %v3265_v32, %v3263_v59  ;;  %v3271_v38 = vrot.slane %v3269_v18, 1 }
 0x187   : > { %v2102_v11 = vshll.u32 %v6341_v31, 16  ;;  %v2099_v42 = vshrl.u32 %v6322_v61, 16  ;;  %v3575_v32 = vrot.slane %v6335_v23, 1  ;;  %v2151_v23 = vshll.u32 %v6404_v46, 16 }
 0x188   : > { %v3250_v45 = vsel %vm415_vm0, %v3246_v51, %v3249_v33  ;;  %v2106_v33 = vshrl.u32 %v6341_v31, 16 }
 0x18b   : > { %4824 = vmatmul.mubr.msk.bf16.gmra.mrb[8].mxu1 %vm618_vm1, %v7166_v19  ;;  %v3272_v19 = vsel %vm415_vm0, %v3267_v13, %v3271_v38 }
 0x18c   : > { %5048 = vmatmul.mubr.msk.bf16.gmra.mrb[32].mxu0 %vm618_vm1, %v6294_v14  ;;  %4827 = vmatprep.mubr.msk.bf16.mxu1 %vm618_vm1, %v7167_v5  ;;  %v3258_v14 = vshrl.u32 %v6547_v41, 16 }
 0x18d   : > { %5051 = vmatprep.mubr.msk.bf16.mxu0 %vm618_vm1, %v3236_v50  ;;  %v7170_v50 = vld [vmem:[#allocation20_spill] sm:$0xff] }
 0x18e   : > { %v3260_v24 = vor.u32 %v3258_v14, %v3256_v60 }
 0x190   : > { %v3264_v17 = vsel %vm415_vm0, %v3260_v24, %v3263_v59  ;;  %v2127_v24 = vshrl.u32 %v6372_v10, 16 }
 0x193   : > { %4828 = vmatmul.mubr.msk.bf16.gmra.mrb[12].mxu1 %vm618_vm1, %v7168_v58 }
 0x194   : > { %5052 = vmatmul.mubr.msk.bf16.gmra.mrb[36].mxu0 %vm618_vm1, %v3243_v12  ;;  %4831 = vmatprep.mubr.msk.bf16.mxu1 %vm618_vm1, %v7169_v30  ;;  %v3573_v30 = vrot.slane %v6325_v63, 1 }
 0x195   : > { %5055 = vmatprep.mubr.msk.bf16.mxu0 %vm618_vm1, %v3250_v45  ;;  %v2113_v45 = vshrl.u32 %v6345_v7, 16 }
 0x196   : > { %v3576_v13 = vsel %vm1198_vm2, %v3573_v30, %v3575_v32 }
 0x19b   : > { %4832 = vmatmul.mubr.msk.bf16.gmra.mrb[16].mxu1 %vm618_vm1, %v7170_v50 }
 0x19c   : > { %5056 = vmatmul.mubr.msk.bf16.gmra.mrb[40].mxu0 %vm618_vm1, %v3257_v16  ;;  %4835 = vmatprep.mubr.msk.bf16.mxu1 %vm618_vm1, %v6025_v39  ;;  %v7171_v39 = vld [vmem:[#allocation35_spill] sm:$0xff]  ;;  %v2134_v16 = vshrl.u32 %v6385_v44, 16 }
 0x19d   : > { %5059 = vmatprep.mubr.msk.bf16.mxu0 %vm618_vm1, %v3264_v17 }
 0x1a3   : > { %4836 = vmatmul.mubr.msk.bf16.gmra.mrb[20].mxu1 %vm618_vm1, %v6037_v52  ;;  %v2078_v52 = vshrl.u32 %v6061_v25, 16 }
 0x1a4   : > { %5060 = vmatmul.mubr.msk.bf16.gmra.mrb[44].mxu0 %vm618_vm1, %v3272_v19  ;;  %4839 = vmatprep.mubr.msk.bf16.mxu1 %vm618_vm1, %v6061_v25  ;;  %v2085_v25 = vshrl.u32 %v6299_v47, 16 }
 0x1a5   : > { %5065 = vmatprep.mubr.msk.bf16.mxu0 %vm618_vm1, %v6512_v48  ;;  %v2081_v48 = vshll.u32 %v6299_v47, 16 }
 0x1ab   : > { %4840 = vmatmul.mubr.msk.bf16.gmra.mrb[24].mxu1 %vm618_vm1, %v6299_v47 }
 0x1ac   : > { %5066 = vmatmul.mubr.msk.bf16.vlgmr.msra.gmra.mrb[0].mxu0 %vm618_vm1, %v6515_v49  ;;  %4843 = vmatprep.mubr.msk.bf16.mxu1 %vm618_vm1, %v7171_v39  ;;  %v7172_v49 = vld [vmem:[#allocation25_spill] sm:$0xff] }
 0x1ad   : > { %5069 = vmatprep.mubr.msk.bf16.mxu0 %vm618_vm1, %v6528_v62  ;;  %v2080_v62 = vor.u32 %v2078_v52, %v7172_v49  ;;  %v2153_v49 = vrot.slane %v2151_v23, 1 }
 0x1b3   : > { %4844 = vmatmul.mubr.msk.bf16.gmra.mrb[28].mxu1 %vm618_vm1, %v6322_v61 }
 0x1b4   : > { %5070 = vmatmul.mubr.msk.bf16.gmra.mrb[4].mxu0 %vm618_vm1, %v6531_v43  ;;  %4847 = vmatprep.mubr.msk.bf16.mxu1 %vm618_vm1, %v6341_v31  ;;  %v2083_v43 = vrot.slane %v2081_v48, 1 }
 0x1b5   : > { %5073 = vmatprep.mubr.msk.bf16.mxu0 %vm618_vm1, %v6544_v4  ;;  %v2088_v4 = vshll.u32 %v7171_v39, 16 }
 0x1bb   : > { %4848 = vmatmul.mubr.msk.bf16.gmra.mrb[32].mxu1 %vm618_vm1, %v6345_v7 }
 0x1bc   : > { %5074 = vmatmul.mubr.msk.bf16.gmra.mrb[8].mxu0 %vm618_vm1, %v6550_v22  ;;  %4851 = vmatprep.mubr.msk.bf16.mxu1 %vm618_vm1, %v6367_v34  ;;  %v2084_v22 = vsel %vm415_vm0, %v2080_v62, %v2083_v43  ;;  %v2130_v34 = vshll.u32 %v6385_v44, 16  ;;  %v3581_v62 = vrot.slane %v6563_v9, 1 }
 0x1bd   : > { %5077 = vmatprep.mubr.msk.bf16.mxu0 %vm618_vm1, %v6566_v37  ;;  %v2092_v37 = vshrl.u32 %v7171_v39, 16  ;;  %v2148_v39 = vshrl.u32 %v6401_v21, 16 }
 0x1be   : > { %v2132_v63 = vrot.slane %v2130_v34, 1 }
 0x1c0   : > { %v2136_v18 = vor.u32 %v2134_v16, %v2132_v63 }
 0x1c3   : > { %4852 = vmatmul.mubr.msk.bf16.gmra.mrb[36].mxu1 %vm618_vm1, %v6372_v10 }
 0x1c4   : > { %5078 = vmatmul.mubr.msk.bf16.gmra.mrb[12].mxu0 %vm618_vm1, %v6569_v56  ;;  %4855 = vmatprep.mubr.msk.bf16.mxu1 %vm618_vm1, %v6385_v44  ;;  %v2095_v56 = vshll.u32 %v6322_v61, 16  ;;  %v2144_v44 = vshll.u32 %v6401_v21, 16 }
 0x1c5   : > { %5081 = vmatprep.mubr.msk.bf16.mxu0 %vm618_vm1, %v6582_v27  ;;  %v2090_v27 = vrot.slane %v2088_v4, 1  ;;  %v2155_v4 = vshrl.u32 %v6404_v46, 16 }
 0x1c7   : > { %v2094_v47 = vor.u32 %v2092_v37, %v2090_v27 }
 0x1cb   : > { %4856 = vmatmul.mubr.msk.bf16.gmra.mrb[40].mxu1 %vm618_vm1, %v6389_v6 }
 0x1cc   : > { %5082 = vmatmul.mubr.msk.bf16.gmra.mrb[16].mxu0 %vm618_vm1, %v6585_v28  ;;  %4859 = vmatprep.mubr.msk.bf16.mxu1 %vm618_vm1, %v6401_v21  ;;  %v2087_v28 = vor.u32 %v2085_v25, %v2083_v43  ;;  %v2159_v25 = vshll.u32 %v6415_v1, 16 }
 0x1cd   : > { %5085 = vmatprep.mubr.msk.bf16.mxu0 %vm618_vm1, %v6599_v3  ;;  %v2097_v3 = vrot.slane %v2095_v56, 1  ;;  %v3583_v56 = vrot.slane %v6716_v15, 1 }
 0x1ce   : > { %v2091_v5 = vsel %vm415_vm0, %v2087_v28, %v2090_v27  ;;  %v2161_v9 = vrot.slane %v2159_v25, 1 }
 0x1cf   : > { %v2098_v51 = vsel %vm415_vm0, %v2094_v47, %v2097_v3  ;;  %v2101_v40 = vor.u32 %v2099_v42, %v2097_v3  ;;  %v3584_v1 = vsel %vm1198_vm2, %v3581_v62, %v3583_v56 }
 0x1d3   : > { %4860 = vmatmul.mubr.msk.bf16.gmra.mrb[44].mxu1 %vm618_vm1, %v6404_v46 }
 0x1d4   : > { %5086 = vmatmul.mubr.msk.bf16.gmra.mrb[20].mxu0 %vm618_vm1, %v6602_v35  ;;  %4889 = vmatprep.mubr.msk.bf16.mxu1 %vm618_vm1, %v2084_v22  ;;  %v2109_v35 = vshll.u32 %v6345_v7, 16 }
 0x1d5   : > { %5089 = vmatprep.mubr.msk.bf16.mxu0 %vm618_vm1, %v6615_v29  ;;  %v2104_v29 = vrot.slane %v2102_v11, 1 }
 0x1d6   : > { %v2111_v61 = vrot.slane %v2109_v35, 1 }
 0x1d7   : > { %v2108_v12 = vor.u32 %v2106_v33, %v2104_v29  ;;  %v2105_v31 = vsel %vm415_vm0, %v2101_v40, %v2104_v29 }
 0x1d8   : > { %v2115_v58 = vor.u32 %v2113_v45, %v2111_v61 }
 0x1d9   : > { %v2112_v14 = vsel %vm415_vm0, %v2108_v12, %v2111_v61 }
 0x1db   : > { %4890 = vmatmul.mubr.msk.bf16.vlgmr.msra.gmra.mrb[24].mxu1 %vm618_vm1, %v2091_v5 }
 0x1dc   : > { %5090 = vmatmul.mubr.msk.bf16.gmra.mrb[24].mxu0 %vm618_vm1, %v6618_v57  ;;  %4893 = vmatprep.mubr.msk.bf16.mxu1 %vm618_vm1, %v2098_v51  ;;  %v2123_v57 = vshll.u32 %v6372_v10, 16 }
 0x1dd   : > { %5093 = vmatprep.mubr.msk.bf16.mxu0 %vm618_vm1, %v6631_v36  ;;  %v2118_v36 = vrot.slane %v2116_v20, 1 }
 0x1de   : > { %v2125_v7 = vrot.slane %v2123_v57, 1 }
 0x1df   : > { %v2122_v60 = vor.u32 %v2120_v0, %v2118_v36  ;;  %v2119_v2 = vsel %vm415_vm0, %v2115_v58, %v2118_v36 }
 0x1e0   : > { %v2129_v10 = vor.u32 %v2127_v24, %v2125_v7 }
 0x1e1   : > { %v2126_v59 = vsel %vm415_vm0, %v2122_v60, %v2125_v7 }
 0x1e2   : > { %v2133_v50 = vsel %vm415_vm0, %v2129_v10, %v2132_v63 }
 0x1e3   : > { %4894 = vmatmul.mubr.msk.bf16.gmra.mrb[28].mxu1 %vm618_vm1, %v2105_v31 }
 0x1e4   : > { %5094 = vmatmul.mubr.msk.bf16.gmra.mrb[28].mxu0 %vm618_vm1, %v6634_v54  ;;  %4897 = vmatprep.mubr.msk.bf16.mxu1 %vm618_vm1, %v2112_v14  ;;  %v3574_v54 = vsel %vm1198_vm2, %v6646_v55, %v3573_v30  ;;  %v3577_v55 = vrot.slane %v6352_v8, 1  ;;  %v2146_v8 = vrot.slane %v2144_v44, 1  ;;  %v6894_v30 = vld [vmem:[#allocation4] ss:$0 sm:$0xff] }
 0x1e5   : > { %5097 = vmatprep.mubr.msk.bf16.mxu0 %vm618_vm1, %v6649_v53  ;;  %v2137_v53 = vshll.u32 %v6389_v6, 16 }
 0x1e6   : > { %v3578_v19 = vsel %vm1198_vm2, %v3575_v32, %v3577_v55  ;;  %v2150_v48 = vor.u32 %v2148_v39, %v2146_v8 }
 0x1e7   : > { %v2139_v17 = vrot.slane %v2137_v53, 1 }
 0x1e8   : > { %v2154_v22 = vsel %vm415_vm0, %v2150_v48, %v2153_v49 }
 0x1e9   : > { %v2140_v38 = vsel %vm415_vm0, %v2136_v18, %v2139_v17 }
 0x1eb   : > { %4898 = vmatmul.mubr.msk.bf16.gmra.mrb[32].mxu1 %vm618_vm1, %v2119_v2 }
 0x1ec   : > { %5098 = vmatmul.mubr.msk.bf16.gmra.mrb[32].mxu0 %vm618_vm1, %v6653_v26  ;;  %4901 = vmatprep.mubr.msk.bf16.mxu1 %vm618_vm1, %v2126_v59  ;;  %v2141_v26 = vshrl.u32 %v6389_v6, 16  ;;  %v3579_v6 = vrot.slane %v6547_v41, 1  ;;  %v2157_v41 = vor.u32 %v2155_v4, %v2153_v49 }
 0x1ed   : > { %5101 = vmatprep.mubr.msk.bf16.mxu0 %vm618_vm1, %v3574_v54 }
 0x1ee   : > { %v2143_v52 = vor.u32 %v2141_v26, %v2139_v17  ;;  %v3580_v43 = vsel %vm1198_vm2, %v3577_v55, %v3579_v6  ;;  %v3582_v37 = vsel %vm1198_vm2, %v3579_v6, %v3581_v62  ;;  %v2162_v46 = vsel %vm415_vm0, %v2157_v41, %v2161_v9 }
 0x1f0   : > { %v2147_v21 = vsel %vm415_vm0, %v2143_v52, %v2146_v8 }
 0x1f3   : > { %4902 = vmatmul.mubr.msk.bf16.gmra.mrb[36].mxu1 %vm618_vm1, %v2133_v50 }
 0x1f4   : > { %5102 = vmatmul.mubr.msk.bf16.gmra.mrb[36].mxu0 %vm618_vm1, %v3576_v13  ;;  %4905 = vmatprep.mubr.msk.bf16.mxu1 %vm618_vm1, %v2140_v38 }
 0x1f5   : > { %5105 = vmatprep.mubr.msk.bf16.mxu0 %vm618_vm1, %v3578_v19 }
 0x1fb   : > { %4906 = vmatmul.mubr.msk.bf16.gmra.mrb[40].mxu1 %vm618_vm1, %v2147_v21 }
 0x1fc   : > { %5106 = vmatmul.mubr.msk.bf16.gmra.mrb[40].mxu0 %vm618_vm1, %v3580_v43  ;;  %4909 = vmatprep.mubr.msk.bf16.mxu1 %vm618_vm1, %v2154_v22 }
 0x1fd   : > { %5109 = vmatprep.mubr.msk.bf16.mxu0 %vm618_vm1, %v3582_v37 }
 0x203   : > { %4910 = vmatmul.mubr.msk.bf16.gmra.mrb[44].mxu1 %vm618_vm1, %v2162_v46 }
 0x204   : > { %5110 = vmatmul.mubr.msk.bf16.gmra.mrb[44].mxu0 %vm618_vm1, %v3584_v1 }
 0x24e   : > { %v4817_v27 = vpop.f32.mrb[0].mxu1 }
 0x24f   : > { %v1746_v28 = vpop.f32.mrb[1].mxu1 }
 0x250   : > { %v4818_v47 = vpop.f32.mrb[2].mxu1 }
 0x251   : > { %v1749_v3 = vpop.f32.mrb[3].mxu1 }
 0x256   : > { %v4821_v11 = vpop.f32.mrb[4].mxu1 }
 0x257   : > { %v1762_v5 = vpop.f32.mrb[5].mxu1 }
 0x258   : > { %v4822_v42 = vpop.f32.mrb[6].mxu1 }
 0x259   : > { %v1765_v51 = vpop.f32.mrb[7].mxu1 }
 0x25e   : > { %v6860_v33 = vpop.f32.mrb[8].mxu1 }
 0x25f   : > { %v6862_v15 = vpop.f32.mrb[9].mxu1 }
 0x260   : > { %v6864_v35 = vpop.f32.mrb[10].mxu1 }
 0x261   : > { %v6866_v29 = vpop.f32.mrb[11].mxu1 }
 0x266   : > { %v6868_v40 = vpop.f32.mrb[12].mxu1 }
 0x267   : > { %v6870_v12 = vpop.f32.mrb[13].mxu1 }
 0x268   : > { %v6872_v61 = vpop.f32.mrb[14].mxu1 }
 0x269   : > { %v6874_v20 = vpop.f32.mrb[15].mxu1 }
 0x26e   : > { %v6876_v31 = vpop.f32.mrb[16].mxu1 }
 0x26f   : > { %v6878_v45 = vpop.f32.mrb[17].mxu1 }
 0x270   : > { %v6880_v14 = vpop.f32.mrb[18].mxu1 }
 0x271   : > { %v6883_v0 = vpop.f32.mrb[19].mxu1 }
 0x276   : > { %v6885_v57 = vpop.f32.mrb[20].mxu1 }
 0x277   : > { %v6887_v36 = vpop.f32.mrb[21].mxu1 }
 0x278   : > { %v6890_v58 = vpop.f32.mrb[22].mxu1 }
 0x279   : > { %v6892_v60 = vpop.f32.mrb[23].mxu1 }
 0x27f   : > { %v5067_v7 = vpop.f32.mrb[0].mxu0 }
 0x280   : > { %v5115_v34 = vadd.f32 %v5067_v7, %v4817_v27  ;;  %v3643_v2 = vpop.f32.mrb[1].mxu0 }
 0x281   : > { %v5116_v24 = vadd.f32 %v3643_v2, %v1746_v28  ;;  %v5068_v59 = vpop.f32.mrb[2].mxu0 }
 0x282   : > { %v3891_v54 = vadd.f32 %v5115_v34, %v6894_v30  ;;  %v5117_v16 = vadd.f32 %v5068_v59, %v4818_v47  ;;  %v3646_v53 = vpop.f32.mrb[3].mxu0 }
 0x283   : > { %v3889_v63 = vadd.f32 %v5116_v24, %v6894_v30  ;;  %v5118_v10 = vadd.f32 %v3646_v53, %v1749_v3 }
 0x284   : > { %v3939_v32 = vmax.f32 %v3891_v54, 0.0  ;;  %v3892_v18 = vadd.f32 %v5117_v16, %v6894_v30 }
 0x285   : > { %v3937_v17 = vmax.f32 %v3889_v63, 0.0  ;;  %v3890_v55 = vadd.f32 %v5118_v10, %v6894_v30 }
 0x286   : > { %3988 = vst.msk [vmem:[%s6900_s26 + $0x10] sm:$0xff] %vm3985_vm3, %v3939_v32  ;;  %v3940_v44 = vmax.f32 %v3892_v18, 0.0 }
 0x287   : > { %3986 = vst.msk [vmem:[%s6900_s26] sm:$0xff] %vm3985_vm3, %v3937_v17  ;;  %v3938_v50 = vmax.f32 %v3890_v55, 0.0  ;;  %v5071_v13 = vpop.f32.mrb[4].mxu0 }
 0x288   : > { %3989 = vst.msk [vmem:[%s6900_s26 + $0x18] sm:$0xff] %vm3985_vm3, %v3940_v44  ;;  %v5119_v26 = vadd.f32 %v5071_v13, %v4821_v11  ;;  %v3659_v38 = vpop.f32.mrb[5].mxu0 }
 0x289   : > { %3987 = vst.msk [vmem:[%s6900_s26 + $0x8] sm:$0xff] %vm3985_vm3, %v3938_v50  ;;  %v5120_v19 = vadd.f32 %v3659_v38, %v1762_v5  ;;  %v5072_v39 = vpop.f32.mrb[6].mxu0 }
 0x28a   : > { %v3895_v23 = vadd.f32 %v5119_v26, %v6894_v30  ;;  %v5121_v8 = vadd.f32 %v5072_v39, %v4822_v42  ;;  %v3662_v52 = vpop.f32.mrb[7].mxu0 }
 0x28b   : > { %v3893_v6 = vadd.f32 %v5120_v19, %v6894_v30  ;;  %v5122_v48 = vadd.f32 %v3662_v52, %v1765_v51 }
 0x28c   : > { %v3943_v49 = vmax.f32 %v3895_v23, 0.0  ;;  %v3896_v62 = vadd.f32 %v5121_v8, %v6894_v30 }
 0x28d   : > { %v3941_v21 = vmax.f32 %v3893_v6, 0.0  ;;  %v3894_v43 = vadd.f32 %v5122_v48, %v6894_v30 }
 0x28e   : > { %3992 = vst.msk [vmem:[%s6900_s26 + $0x30] sm:$0xff] %vm3985_vm3, %v3943_v49  ;;  %v3944_v4 = vmax.f32 %v3896_v62, 0.0 }
 0x28f   : > { %3990 = vst.msk [vmem:[%s6900_s26 + $0x20] sm:$0xff] %vm3985_vm3, %v3941_v21  ;;  %v3942_v25 = vmax.f32 %v3894_v43, 0.0  ;;  %v5075_v22 = vpop.f32.mrb[8].mxu0 }
 0x290   : > { %3993 = vst.msk [vmem:[%s6900_s26 + $0x38] sm:$0xff] %vm3985_vm3, %v3944_v4  ;;  %v5123_v37 = vadd.f32 %v5075_v22, %v6860_v33  ;;  %v3675_v41 = vpop.f32.mrb[9].mxu0 }
 0x291   : > { %3991 = vst.msk [vmem:[%s6900_s26 + $0x28] sm:$0xff] %vm3985_vm3, %v3942_v25  ;;  %v5124_v9 = vadd.f32 %v3675_v41, %v6862_v15  ;;  %v5076_v56 = vpop.f32.mrb[10].mxu0 }
 0x292   : > { %v3899_v46 = vadd.f32 %v5123_v37, %v6894_v30  ;;  %v5125_v1 = vadd.f32 %v5076_v56, %v6864_v35  ;;  %v3678_v27 = vpop.f32.mrb[11].mxu0 }
 0x293   : > { %v3897_v28 = vadd.f32 %v5124_v9, %v6894_v30  ;;  %v5126_v47 = vadd.f32 %v3678_v27, %v6866_v29 }
 0x294   : > { %v3947_v3 = vmax.f32 %v3899_v46, 0.0  ;;  %v3900_v11 = vadd.f32 %v5125_v1, %v6894_v30 }
 0x295   : > { %v3945_v5 = vmax.f32 %v3897_v28, 0.0  ;;  %v3898_v42 = vadd.f32 %v5126_v47, %v6894_v30 }
 0x296   : > { %3996 = vst.msk [vmem:[%s6900_s26 + $0x50] sm:$0xff] %vm3985_vm3, %v3947_v3  ;;  %v3948_v51 = vmax.f32 %v3900_v11, 0.0 }
 0x297   : > { %3994 = vst.msk [vmem:[%s6900_s26 + $0x40] sm:$0xff] %vm3985_vm3, %v3945_v5  ;;  %v3946_v33 = vmax.f32 %v3898_v42, 0.0  ;;  %v5079_v15 = vpop.f32.mrb[12].mxu0 }
 0x298   : > { %3997 = vst.msk [vmem:[%s6900_s26 + $0x58] sm:$0xff] %vm3985_vm3, %v3948_v51  ;;  %v5127_v35 = vadd.f32 %v5079_v15, %v6868_v40  ;;  %v3691_v29 = vpop.f32.mrb[13].mxu0 }
 0x299   : > { %3995 = vst.msk [vmem:[%s6900_s26 + $0x48] sm:$0xff] %vm3985_vm3, %v3946_v33  ;;  %v5128_v7 = vadd.f32 %v3691_v29, %v6870_v12  ;;  %v5080_v34 = vpop.f32.mrb[14].mxu0 }
 0x29a   : > { %v3903_v2 = vadd.f32 %v5127_v35, %v6894_v30  ;;  %v5129_v24 = vadd.f32 %v5080_v34, %v6872_v61  ;;  %v3694_v59 = vpop.f32.mrb[15].mxu0 }
 0x29b   : > { %v3901_v54 = vadd.f32 %v5128_v7, %v6894_v30  ;;  %v5130_v16 = vadd.f32 %v3694_v59, %v6874_v20 }
 0x29c   : > { %v3951_v53 = vmax.f32 %v3903_v2, 0.0  ;;  %v3904_v40 = vadd.f32 %v5129_v24, %v6894_v30 }
 0x29d   : > { %v3949_v63 = vmax.f32 %v3901_v54, 0.0  ;;  %v3902_v10 = vadd.f32 %v5130_v16, %v6894_v30 }
 0x29e   : > { %4000 = vst.msk [vmem:[%s6900_s26 + $0x70] sm:$0xff] %vm3985_vm3, %v3951_v53  ;;  %v3952_v12 = vmax.f32 %v3904_v40, 0.0 }
 0x29f   : > { %3998 = vst.msk [vmem:[%s6900_s26 + $0x60] sm:$0xff] %vm3985_vm3, %v3949_v63  ;;  %v3950_v32 = vmax.f32 %v3902_v10, 0.0  ;;  %v5083_v18 = vpop.f32.mrb[16].mxu0 }
 0x2a0   : > { %4001 = vst.msk [vmem:[%s6900_s26 + $0x78] sm:$0xff] %vm3985_vm3, %v3952_v12  ;;  %v5131_v61 = vadd.f32 %v5083_v18, %v6876_v31  ;;  %v3707_v20 = vpop.f32.mrb[17].mxu0 }
 0x2a1   : > { %3999 = vst.msk [vmem:[%s6900_s26 + $0x68] sm:$0xff] %vm3985_vm3, %v3950_v32  ;;  %v5132_v17 = vadd.f32 %v3707_v20, %v6878_v45  ;;  %v5084_v55 = vpop.f32.mrb[18].mxu0 }
 0x2a2   : > { %v3907_v44 = vadd.f32 %v5131_v61, %v6894_v30  ;;  %v5133_v50 = vadd.f32 %v5084_v55, %v6880_v14  ;;  %v3710_v13 = vpop.f32.mrb[19].mxu0 }
 0x2a3   : > { %v3905_v26 = vadd.f32 %v5132_v17, %v6894_v30  ;;  %v5134_v38 = vadd.f32 %v3710_v13, %v6883_v0 }
 0x2a4   : > { %v3955_v19 = vmax.f32 %v3907_v44, 0.0  ;;  %v3908_v31 = vadd.f32 %v5133_v50, %v6894_v30 }
 0x2a5   : > { %v3953_v39 = vmax.f32 %v3905_v26, 0.0  ;;  %v3906_v23 = vadd.f32 %v5134_v38, %v6894_v30 }
 0x2a6   : > { %4004 = vst.msk [vmem:[%s6900_s26 + $0x90] sm:$0xff] %vm3985_vm3, %v3955_v19  ;;  %v3956_v45 = vmax.f32 %v3908_v31, 0.0 }
 0x2a7   : > { %4002 = vst.msk [vmem:[%s6900_s26 + $0x80] sm:$0xff] %vm3985_vm3, %v3953_v39  ;;  %v3954_v8 = vmax.f32 %v3906_v23, 0.0  ;;  %v5087_v52 = vpop.f32.mrb[20].mxu0 }
 0x2a8   : > { %4005 = vst.msk [vmem:[%s6900_s26 + $0x98] sm:$0xff] %vm3985_vm3, %v3956_v45  ;;  %v5135_v14 = vadd.f32 %v5087_v52, %v6885_v57  ;;  %v3723_v0 = vpop.f32.mrb[21].mxu0 }
 0x2a9   : > { %4003 = vst.msk [vmem:[%s6900_s26 + $0x88] sm:$0xff] %vm3985_vm3, %v3954_v8  ;;  %v5136_v6 = vadd.f32 %v3723_v0, %v6887_v36  ;;  %v5088_v48 = vpop.f32.mrb[22].mxu0 }
 0x2aa   : > { %v3911_v49 = vadd.f32 %v5135_v14, %v6894_v30  ;;  %v5137_v62 = vadd.f32 %v5088_v48, %v6890_v58  ;;  %v3726_v21 = vpop.f32.mrb[23].mxu0 }
 0x2ab   : > { %v3909_v43 = vadd.f32 %v5136_v6, %v6894_v30  ;;  %v5138_v4 = vadd.f32 %v3726_v21, %v6892_v60 }
 0x2ac   : > { %v3959_v25 = vmax.f32 %v3911_v49, 0.0  ;;  %v3912_v57 = vadd.f32 %v5137_v62, %v6894_v30 }
 0x2ad   : > { %v3957_v22 = vmax.f32 %v3909_v43, 0.0  ;;  %v3910_v37 = vadd.f32 %v5138_v4, %v6894_v30 }
 0x2ae   : > { %4008 = vst.msk [vmem:[%s6900_s26 + $0xb0] sm:$0xff] %vm3985_vm3, %v3959_v25  ;;  %v3960_v36 = vmax.f32 %v3912_v57, 0.0  ;;  %v4891_v9 = vpop.f32.mrb[24].mxu1 }
 0x2af   : > { %4006 = vst.msk [vmem:[%s6900_s26 + $0xa0] sm:$0xff] %vm3985_vm3, %v3957_v22  ;;  %v3958_v41 = vmax.f32 %v3910_v37, 0.0  ;;  %v5091_v58 = vpop.f32.mrb[24].mxu0  ;;  %v2371_v46 = vpop.f32.mrb[25].mxu1 }
 0x2b0   : > { %4009 = vst.msk [vmem:[%s6900_s26 + $0xb8] sm:$0xff] %vm3985_vm3, %v3960_v36  ;;  %v5139_v56 = vadd.f32 %v5091_v58, %v4891_v9  ;;  %v3739_v60 = vpop.f32.mrb[25].mxu0  ;;  %v4892_v27 = vpop.f32.mrb[26].mxu1 }
 0x2b1   : > { %4007 = vst.msk [vmem:[%s6900_s26 + $0xa8] sm:$0xff] %vm3985_vm3, %v3958_v41  ;;  %v5140_v1 = vadd.f32 %v3739_v60, %v2371_v46  ;;  %v5092_v28 = vpop.f32.mrb[26].mxu0  ;;  %v2374_v11 = vpop.f32.mrb[27].mxu1 }
 0x2b2   : > { %v3915_v47 = vadd.f32 %v5139_v56, %v6894_v30  ;;  %v5141_v3 = vadd.f32 %v5092_v28, %v4892_v27  ;;  %v3742_v5 = vpop.f32.mrb[27].mxu0 }
 0x2b3   : > { %v3913_v42 = vadd.f32 %v5140_v1, %v6894_v30  ;;  %v5142_v51 = vadd.f32 %v3742_v5, %v2374_v11 }
 0x2b4   : > { %v3963_v33 = vmax.f32 %v3915_v47, 0.0  ;;  %v3916_v15 = vadd.f32 %v5141_v3, %v6894_v30 }
 0x2b5   : > { %v3961_v35 = vmax.f32 %v3913_v42, 0.0  ;;  %v3914_v29 = vadd.f32 %v5142_v51, %v6894_v30 }
 0x2b6   : > { %4012 = vst.msk [vmem:[%s6900_s26 + $0xd0] sm:$0xff] %vm3985_vm3, %v3963_v33  ;;  %v3964_v7 = vmax.f32 %v3916_v15, 0.0  ;;  %v4895_v2 = vpop.f32.mrb[28].mxu1 }
 0x2b7   : > { %4010 = vst.msk [vmem:[%s6900_s26 + $0xc0] sm:$0xff] %vm3985_vm3, %v3961_v35  ;;  %v3962_v34 = vmax.f32 %v3914_v29, 0.0  ;;  %v5095_v24 = vpop.f32.mrb[28].mxu0  ;;  %v2387_v54 = vpop.f32.mrb[29].mxu1 }
 0x2b8   : > { %4013 = vst.msk [vmem:[%s6900_s26 + $0xd8] sm:$0xff] %vm3985_vm3, %v3964_v7  ;;  %v5143_v59 = vadd.f32 %v5095_v24, %v4895_v2  ;;  %v3755_v16 = vpop.f32.mrb[29].mxu0  ;;  %v4896_v40 = vpop.f32.mrb[30].mxu1 }
 0x2b9   : > { %4011 = vst.msk [vmem:[%s6900_s26 + $0xc8] sm:$0xff] %vm3985_vm3, %v3962_v34  ;;  %v5144_v53 = vadd.f32 %v3755_v16, %v2387_v54  ;;  %v5096_v63 = vpop.f32.mrb[30].mxu0  ;;  %v2390_v32 = vpop.f32.mrb[31].mxu1 }
 0x2ba   : > { %v3919_v10 = vadd.f32 %v5143_v59, %v6894_v30  ;;  %v5145_v12 = vadd.f32 %v5096_v63, %v4896_v40  ;;  %v3758_v18 = vpop.f32.mrb[31].mxu0 }
 0x2bb   : > { %v3917_v61 = vadd.f32 %v5144_v53, %v6894_v30  ;;  %v5146_v20 = vadd.f32 %v3758_v18, %v2390_v32 }
 0x2bc   : > { %v3967_v17 = vmax.f32 %v3919_v10, 0.0  ;;  %v3920_v55 = vadd.f32 %v5145_v12, %v6894_v30 }
 0x2bd   : > { %v3965_v44 = vmax.f32 %v3917_v61, 0.0  ;;  %v3918_v50 = vadd.f32 %v5146_v20, %v6894_v30 }
 0x2be   : > { %4016 = vst.msk [vmem:[%s6900_s26 + $0xf0] sm:$0xff] %vm3985_vm3, %v3967_v17  ;;  %v3968_v13 = vmax.f32 %v3920_v55, 0.0  ;;  %v4899_v38 = vpop.f32.mrb[32].mxu1 }
 0x2bf   : > { %4014 = vst.msk [vmem:[%s6900_s26 + $0xe0] sm:$0xff] %vm3985_vm3, %v3965_v44  ;;  %v3966_v26 = vmax.f32 %v3918_v50, 0.0  ;;  %v5099_v19 = vpop.f32.mrb[32].mxu0  ;;  %v2403_v39 = vpop.f32.mrb[33].mxu1 }
 0x2c0   : > { %4017 = vst.msk [vmem:[%s6900_s26 + $0xf8] sm:$0xff] %vm3985_vm3, %v3968_v13  ;;  %v5147_v31 = vadd.f32 %v5099_v19, %v4899_v38  ;;  %v3771_v23 = vpop.f32.mrb[33].mxu0  ;;  %v4900_v8 = vpop.f32.mrb[34].mxu1 }
 0x2c1   : > { %4015 = vst.msk [vmem:[%s6900_s26 + $0xe8] sm:$0xff] %vm3985_vm3, %v3966_v26  ;;  %v5148_v45 = vadd.f32 %v3771_v23, %v2403_v39  ;;  %v5100_v52 = vpop.f32.mrb[34].mxu0  ;;  %v2406_v6 = vpop.f32.mrb[35].mxu1 }
 0x2c2   : > { %v3923_v14 = vadd.f32 %v5147_v31, %v6894_v30  ;;  %v5149_v0 = vadd.f32 %v5100_v52, %v4900_v8  ;;  %v3774_v48 = vpop.f32.mrb[35].mxu0 }
 0x2c3   : > { %v3921_v49 = vadd.f32 %v5148_v45, %v6894_v30  ;;  %v5150_v62 = vadd.f32 %v3774_v48, %v2406_v6 }
 0x2c4   : > { %v3971_v21 = vmax.f32 %v3923_v14, 0.0  ;;  %v3924_v43 = vadd.f32 %v5149_v0, %v6894_v30 }
 0x2c5   : > { %v3969_v4 = vmax.f32 %v3921_v49, 0.0  ;;  %v3922_v25 = vadd.f32 %v5150_v62, %v6894_v30 }
 0x2c6   : > { %4020 = vst.msk [vmem:[%s6900_s26 + $0x110] sm:$0xff] %vm3985_vm3, %v3971_v21  ;;  %v3972_v57 = vmax.f32 %v3924_v43, 0.0  ;;  %v4903_v37 = vpop.f32.mrb[36].mxu1 }
 0x2c7   : > { %4018 = vst.msk [vmem:[%s6900_s26 + $0x100] sm:$0xff] %vm3985_vm3, %v3969_v4  ;;  %v3970_v22 = vmax.f32 %v3922_v25, 0.0  ;;  %v5103_v36 = vpop.f32.mrb[36].mxu0  ;;  %v2419_v9 = vpop.f32.mrb[37].mxu1 }
 0x2c8   : > { %4021 = vst.msk [vmem:[%s6900_s26 + $0x118] sm:$0xff] %vm3985_vm3, %v3972_v57  ;;  %v5151_v41 = vadd.f32 %v5103_v36, %v4903_v37  ;;  %v3787_v58 = vpop.f32.mrb[37].mxu0  ;;  %v4904_v46 = vpop.f32.mrb[38].mxu1 }
 0x2c9   : > { %4019 = vst.msk [vmem:[%s6900_s26 + $0x108] sm:$0xff] %vm3985_vm3, %v3970_v22  ;;  %v5152_v56 = vadd.f32 %v3787_v58, %v2419_v9  ;;  %v5104_v60 = vpop.f32.mrb[38].mxu0  ;;  %v2422_v28 = vpop.f32.mrb[39].mxu1 }
 0x2ca   : > { %v3927_v1 = vadd.f32 %v5151_v41, %v6894_v30  ;;  %v5153_v27 = vadd.f32 %v5104_v60, %v4904_v46  ;;  %v3790_v47 = vpop.f32.mrb[39].mxu0 }
 0x2cb   : > { %v3925_v3 = vadd.f32 %v5152_v56, %v6894_v30  ;;  %v5154_v11 = vadd.f32 %v3790_v47, %v2422_v28 }
 0x2cc   : > { %v3975_v5 = vmax.f32 %v3927_v1, 0.0  ;;  %v3928_v42 = vadd.f32 %v5153_v27, %v6894_v30 }
 0x2cd   : > { %v3973_v51 = vmax.f32 %v3925_v3, 0.0  ;;  %v3926_v33 = vadd.f32 %v5154_v11, %v6894_v30 }
 0x2ce   : > { %4024 = vst.msk [vmem:[%s6900_s26 + $0x130] sm:$0xff] %vm3985_vm3, %v3975_v5  ;;  %v3976_v15 = vmax.f32 %v3928_v42, 0.0  ;;  %v4907_v29 = vpop.f32.mrb[40].mxu1 }
 0x2cf   : > { %4022 = vst.msk [vmem:[%s6900_s26 + $0x120] sm:$0xff] %vm3985_vm3, %v3973_v51  ;;  %v3974_v35 = vmax.f32 %v3926_v33, 0.0  ;;  %v5107_v7 = vpop.f32.mrb[40].mxu0  ;;  %v2435_v2 = vpop.f32.mrb[41].mxu1 }
 0x2d0   : > { %4025 = vst.msk [vmem:[%s6900_s26 + $0x138] sm:$0xff] %vm3985_vm3, %v3976_v15  ;;  %v5155_v34 = vadd.f32 %v5107_v7, %v4907_v29  ;;  %v3803_v24 = vpop.f32.mrb[41].mxu0  ;;  %v4908_v54 = vpop.f32.mrb[42].mxu1 }
 0x2d1   : > { %4023 = vst.msk [vmem:[%s6900_s26 + $0x128] sm:$0xff] %vm3985_vm3, %v3974_v35  ;;  %v5156_v59 = vadd.f32 %v3803_v24, %v2435_v2  ;;  %v5108_v16 = vpop.f32.mrb[42].mxu0  ;;  %v2438_v63 = vpop.f32.mrb[43].mxu1 }
 0x2d2   : > { %v3931_v53 = vadd.f32 %v5155_v34, %v6894_v30  ;;  %v5157_v40 = vadd.f32 %v5108_v16, %v4908_v54  ;;  %v3806_v10 = vpop.f32.mrb[43].mxu0 }
 0x2d3   : > { %v3929_v12 = vadd.f32 %v5156_v59, %v6894_v30  ;;  %v5158_v32 = vadd.f32 %v3806_v10, %v2438_v63 }
 0x2d4   : > { %v3979_v18 = vmax.f32 %v3931_v53, 0.0  ;;  %v3932_v61 = vadd.f32 %v5157_v40, %v6894_v30 }
 0x2d5   : > { %v3977_v20 = vmax.f32 %v3929_v12, 0.0  ;;  %v3930_v17 = vadd.f32 %v5158_v32, %v6894_v30 }
 0x2d6   : > { %4028 = vst.msk [vmem:[%s6900_s26 + $0x150] sm:$0xff] %vm3985_vm3, %v3979_v18  ;;  %v3980_v55 = vmax.f32 %v3932_v61, 0.0  ;;  %v4911_v50 = vpop.f32.mrb[44].mxu1 }
 0x2d7   : > { %4026 = vst.msk [vmem:[%s6900_s26 + $0x140] sm:$0xff] %vm3985_vm3, %v3977_v20  ;;  %v3978_v44 = vmax.f32 %v3930_v17, 0.0  ;;  %v5111_v13 = vpop.f32.mrb[44].mxu0  ;;  %v2451_v38 = vpop.f32.mrb[45].mxu1 }
 0x2d8   : > { %4029 = vst.msk [vmem:[%s6900_s26 + $0x158] sm:$0xff] %vm3985_vm3, %v3980_v55  ;;  %v5159_v26 = vadd.f32 %v5111_v13, %v4911_v50  ;;  %v3819_v19 = vpop.f32.mrb[45].mxu0  ;;  %v4912_v39 = vpop.f32.mrb[46].mxu1 }
 0x2d9   : > { %4027 = vst.msk [vmem:[%s6900_s26 + $0x148] sm:$0xff] %vm3985_vm3, %v3978_v44  ;;  %v5160_v31 = vadd.f32 %v3819_v19, %v2451_v38  ;;  %v5112_v23 = vpop.f32.mrb[46].mxu0  ;;  %v2454_v52 = vpop.f32.mrb[47].mxu1 }
 0x2da   : > { %v3935_v45 = vadd.f32 %v5159_v26, %v6894_v30  ;;  %v5161_v8 = vadd.f32 %v5112_v23, %v4912_v39  ;;  %v3822_v14 = vpop.f32.mrb[47].mxu0 }
 0x2db   : > { %v3933_v0 = vadd.f32 %v5160_v31, %v6894_v30  ;;  %v5162_v6 = vadd.f32 %v3822_v14, %v2454_v52 }
 0x2dc   : > { %v3983_v48 = vmax.f32 %v3935_v45, 0.0  ;;  %v3936_v49 = vadd.f32 %v5161_v8, %v6894_v30 }
 0x2dd   : > { %v3981_v62 = vmax.f32 %v3933_v0, 0.0  ;;  %v3934_v21 = vadd.f32 %v5162_v6, %v6894_v30 }
 0x2de   : > { %4032 = vst.msk [vmem:[%s6900_s26 + $0x170] sm:$0xff] %vm3985_vm3, %v3983_v48  ;;  %v3984_v43 = vmax.f32 %v3936_v49, 0.0 }
 0x2df   : > { %4030 = vst.msk [vmem:[%s6900_s26 + $0x160] sm:$0xff] %vm3985_vm3, %v3981_v62  ;;  %v3982_v4 = vmax.f32 %v3934_v21, 0.0 }
 0x2e0   : > { %4033 = vst.msk [vmem:[%s6900_s26 + $0x178] sm:$0xff] %vm3985_vm3, %v3984_v43 }
 0x2e1   : > { %4031 = vst.msk [vmem:[%s6900_s26 + $0x168] sm:$0xff] %vm3985_vm3, %v3982_v4 }
 0x2e2 PF: > { %s15_s16 = sadd.s32 1, %s5732_s16   ;;  %s7173_s12 = smov %s5724_s14 }
 0x2e3   : > { %p12_p8 = scmp.ge.s32.totalorder %s15_s16, 10   ;;  %s7174_s13 = smov %s5728_s15 }
 0x2e4   : > { %s7175_s14 = smov %s7178_s18  ;;  %s7176_s15 = smov %s7182_s19 }
 0x2e5   :  { %14 = sbr.rel (!%p12_p8) target bundleno = 4 (0x4), region = 80 }
 0x2ec   :  { %4064 = vsyncpa [#allocation3], 1 }
 0x2ed   :  { %4066 = vsyncpa [#allocation3 + $0x1], 1 }
 0x2ee   :  { %4067 = vsyncpa [#allocation5], 1 }

</bundles_post_ra>
